<compile_context>
chip_gen: v5e
topology: v5e:2x2
jax: 0.10.0
libtpu: 0.0.40
codegen_flags: <defaults>
</compile_context>

<pallas_src>
import functools

import jax
import jax.numpy as jnp
from jax import lax
from jax.experimental import pallas as pl
from jax.experimental.pallas import tpu as pltpu

FEATURE_SIZE = 32
MIDDLE_SIZE = 128


def _round_up(x, m):
    return (x + m - 1) // m * m


def _softplus(x):
    # matches F.softplus (beta=1), numerically stable
    return jnp.logaddexp(x, 0.0)


def _mm(a, b, dtype):
    # MXU matmul: operands cast to `dtype`, accumulate in f32.
    return jnp.dot(a.astype(dtype), b.astype(dtype),
                   preferred_element_type=jnp.float32)


def _encode(s, w1, b1, w2, b2, w3, b3, dtype):
    h = jnp.maximum(_mm(s, w1, dtype) + b1, 0.0)
    h = jnp.maximum(_mm(h, w2, dtype) + b2, 0.0)
    v = _mm(h, w3, dtype) + b3
    # L2 normalize (torch.norm(v, dim=-1, keepdim=True)); rsqrt -> EUP slot.
    # NOTE: no epsilon, matching the PyTorch module exactly.
    return v * lax.rsqrt(jnp.sum(v * v, axis=-1, keepdims=True))


# ---------------- pass 1: a2 = encode(s2) @ softplus(W), tiled over B2 ------
def _encode_project_kernel(s_ref, w1_ref, b1_ref, w2_ref, b2_ref, w3_ref,
                           b3_ref, W_ref, a_ref, *, compute_dtype):
    z = _encode(s_ref[...], w1_ref[...], b1_ref[...], w2_ref[...], b2_ref[...],
                w3_ref[...], b3_ref[...], compute_dtype)
    sp = _softplus(W_ref[...])
    a_ref[...] = _mm(z, sp, compute_dtype)


# ---------------- pass 2: logits tile = (z1@sp) @ a2.T - rowmax -------------
def _logits_kernel(s1_ref, a2_ref, w1_ref, b1_ref, w2_ref, b2_ref, w3_ref,
                   b3_ref, W_ref, out_ref, *, compute_dtype, valid_cols):
    z1 = _encode(s1_ref[...], w1_ref[...], b1_ref[...], w2_ref[...],
                 b2_ref[...], w3_ref[...], b3_ref[...], compute_dtype)
    sp = _softplus(W_ref[...])
    a1 = _mm(z1, sp, compute_dtype)                     # (TM, F) f32
    a2 = a2_ref[...]                                    # (B2_pad, F) f32

    # logits = a1 @ a2.T without materializing a transpose (MXU loads rhs
    # transposed for free via dot_general contracting dims (1, 1)).
    logits = lax.dot_general(
        a1.astype(compute_dtype), a2.astype(compute_dtype),
        dimension_numbers=(((1,), (1,)), ((), ())),
        preferred_element_type=jnp.float32)             # (TM, B2_pad)

    if valid_cols < logits.shape[1]:
        # exclude padded B2 columns from the row max
        col = lax.broadcasted_iota(jnp.int32, logits.shape, 1)
        masked = jnp.where(col < valid_cols, logits, -jnp.inf)
    else:
        masked = logits

    out_ref[...] = logits - jnp.max(masked, axis=1, keepdims=True)


# ---------------- wrapper ----------------------------------------------------
@functools.partial(
    jax.jit,
    static_argnames=("block_m", "block_n", "compute_dtype", "vmem_limit_bytes"))
def contrastive_pd_forward(s1, s2, params, *, block_m=256, block_n=512,
                           compute_dtype=jnp.bfloat16,
                           vmem_limit_bytes=48 * 1024 * 1024):
    w1, b1, w2, b2, w3, b3, W = params
    B1, in_size = s1.shape
    B2 = s2.shape[0]

    # Tile sizes: rows multiple of 8 (sublanes); output lane dim padded to 128.
    tn = min(block_n, _round_up(B2, 128))
    b2_pad = _round_up(B2, tn)
    tm = min(block_m, _round_up(B1, 8))
    b1_pad = _round_up(B1, tm)

    s1p = s1 if b1_pad == B1 else jnp.pad(s1, ((0, b1_pad - B1), (0, 0)))
    s2p = s2 if b2_pad == B2 else jnp.pad(s2, ((0, b2_pad - B2), (0, 0)))

    def full(shape):
        return pl.BlockSpec(shape, lambda i: (0,) * len(shape))

    weight_specs = [full(w1.shape), full(b1.shape), full(w2.shape),
                    full(b2.shape), full(w3.shape), full(b3.shape),
                    full(W.shape)]

    cparams = pltpu.CompilerParams(
        dimension_semantics=("parallel",),
        vmem_limit_bytes=vmem_limit_bytes)

    # pass 1: project s2 once
    a2 = pl.pallas_call(
        functools.partial(_encode_project_kernel, compute_dtype=compute_dtype),
        out_shape=jax.ShapeDtypeStruct((b2_pad, FEATURE_SIZE), jnp.float32),
        grid=(b2_pad // tn,),
        in_specs=[pl.BlockSpec((tn, in_size), lambda i: (i, 0))] + weight_specs,
        out_specs=pl.BlockSpec((tn, FEATURE_SIZE), lambda i: (i, 0)),
        compiler_params=cparams,
    )(s2p, w1, b1, w2, b2, w3, b3, W)

    # pass 2: tile over B1, B2 kept whole so the row-max sees the full row
    out = pl.pallas_call(
        functools.partial(_logits_kernel, compute_dtype=compute_dtype,
                          valid_cols=B2),
        out_shape=jax.ShapeDtypeStruct((b1_pad, b2_pad), jnp.float32),
        grid=(b1_pad // tm,),
        in_specs=[pl.BlockSpec((tm, in_size), lambda i: (i, 0)),
                  full((b2_pad, FEATURE_SIZE))] + weight_specs,
        out_specs=pl.BlockSpec((tm, b2_pad), lambda i: (i, 0)),
        compiler_params=cparams,
    )(s1p, a2, w1, b1, w2, b2, w3, b3, W)

    return out[:B1, :B2]


# ---------------- params + pure-JAX reference -------------------------------
def make_params(key, input_size):
    ks = jax.random.split(key, 4)

    def lin(k, fan_in, fan_out):
        bound = 1.0 / jnp.sqrt(fan_in)
        kw, kb = jax.random.split(k)
        w = jax.random.uniform(kw, (fan_in, fan_out), jnp.float32, -bound, bound)
        b = jax.random.uniform(kb, (1, fan_out), jnp.float32, -bound, bound)
        return w, b

    w1, b1 = lin(ks[0], input_size, MIDDLE_SIZE)
    w2, b2 = lin(ks[1], MIDDLE_SIZE, MIDDLE_SIZE)
    w3, b3 = lin(ks[2], MIDDLE_SIZE, FEATURE_SIZE)
    W = jax.random.uniform(ks[3], (FEATURE_SIZE, FEATURE_SIZE))  # torch.rand
    return (w1, b1, w2, b2, w3, b3, W)


def reference_forward(s1, s2, params, compute_dtype=jnp.float32):
    w1, b1, w2, b2, w3, b3, W = params
    z1 = _encode(s1, w1, b1, w2, b2, w3, b3, compute_dtype)
    z2 = _encode(s2, w1, b1, w2, b2, w3, b3, compute_dtype)
    sp = _softplus(W)
    # (z1 @ sp) @ (z2 @ sp).T  ==  z1 @ (sp @ sp.T) @ z2.T
    a1 = _mm(z1, sp, compute_dtype)
    a2 = _mm(z2, sp, compute_dtype)
    logits = _mm(a1, a2.T, compute_dtype)
    return logits - jnp.max(logits, axis=1, keepdims=True)


if __name__ == "__main__":
    key = jax.random.PRNGKey(0)
    k_params, k_s1, k_s2, k_s3, k_s4 = jax.random.split(key, 5)

    input_size = 32
    params = make_params(k_params, input_size)

    # Small case: single B1 tile, B2 padded 8 -> 128 (masked row-max path).
    s1 = jax.random.normal(k_s1, (8, input_size), jnp.float32)
    s2 = jax.random.normal(k_s2, (8, input_size), jnp.float32)

    out_f32 = jax.block_until_ready(
        contrastive_pd_forward(s1, s2, params, compute_dtype=jnp.float32))
    ref_f32 = reference_forward(s1, s2, params, compute_dtype=jnp.float32)
    assert out_f32.shape == (8, 8), out_f32.shape
    assert jnp.allclose(out_f32, ref_f32, atol=1e-4, rtol=1e-4), "f32 mismatch"

    out_bf16 = jax.block_until_ready(contrastive_pd_forward(s1, s2, params))
    ref_bf16 = reference_forward(s1, s2, params, compute_dtype=jnp.bfloat16)
    assert jnp.allclose(out_bf16, ref_bf16, atol=2e-3, rtol=2e-3), "bf16 mismatch"

    # Multi-tile case: 3 B1 tiles, 2 B2 tiles in pass 1, column masking in pass 2.
    s1b = jax.random.normal(k_s3, (48, input_size), jnp.float32)
    s2b = jax.random.normal(k_s4, (200, input_size), jnp.float32)
    out_b = jax.block_until_ready(
        contrastive_pd_forward(s1b, s2b, params, block_m=16, block_n=128,
                               compute_dtype=jnp.float32))
    ref_b = reference_forward(s1b, s2b, params, compute_dtype=jnp.float32)
    assert out_b.shape == (48, 200), out_b.shape
    assert jnp.allclose(out_b, ref_b, atol=1e-4, rtol=1e-4), "tiled mismatch"

    print("KERNEL_OK")
</pallas_src>

<mosaic_0001>
module attributes {stable_mosaic.version = 11 : i64} {
  func.func @_encode_project_kernel(%arg0: i32, %arg1: memref<128x32xf32, #tpu.memory_space<vmem>>, %arg2: memref<32x128xf32, #tpu.memory_space<vmem>>, %arg3: memref<1x128xf32, #tpu.memory_space<vmem>>, %arg4: memref<128x128xf32, #tpu.memory_space<vmem>>, %arg5: memref<1x128xf32, #tpu.memory_space<vmem>>, %arg6: memref<128x32xf32, #tpu.memory_space<vmem>>, %arg7: memref<1x32xf32, #tpu.memory_space<vmem>>, %arg8: memref<32x32xf32, #tpu.memory_space<vmem>>, %arg9: memref<128x32xf32, #tpu.memory_space<vmem>>) attributes {dimension_semantics = [#tpu.dimension_semantics<parallel>], iteration_bounds = array<i64: 1>, scalar_prefetch = 0 : i64, scratch_operands = 0 : i64, tpu.core_type = #tpu.core_type<tc>, window_params = [{transform_indices = @transform_0, window_bounds = array<i64: 128, 32>}, {pipeline_mode = #tpu.pipeline_mode<synchronous>, transform_indices = @transform_1, window_bounds = array<i64: 32, 128>}, {pipeline_mode = #tpu.pipeline_mode<synchronous>, transform_indices = @transform_2, window_bounds = array<i64: 1, 128>}, {pipeline_mode = #tpu.pipeline_mode<synchronous>, transform_indices = @transform_3, window_bounds = array<i64: 128, 128>}, {pipeline_mode = #tpu.pipeline_mode<synchronous>, transform_indices = @transform_4, window_bounds = array<i64: 1, 128>}, {pipeline_mode = #tpu.pipeline_mode<synchronous>, transform_indices = @transform_5, window_bounds = array<i64: 128, 32>}, {pipeline_mode = #tpu.pipeline_mode<synchronous>, transform_indices = @transform_6, window_bounds = array<i64: 1, 32>}, {pipeline_mode = #tpu.pipeline_mode<synchronous>, transform_indices = @transform_7, window_bounds = array<i64: 32, 32>}, {transform_indices = @transform_8, window_bounds = array<i64: 128, 32>}]} {
    %c0 = arith.constant 0 : index
    %c0_0 = arith.constant 0 : index
    %0 = vector.load %arg1[%c0, %c0_0] : memref<128x32xf32, #tpu.memory_space<vmem>>, vector<128x32xf32>
    %c0_1 = arith.constant 0 : index
    %c0_2 = arith.constant 0 : index
    %1 = vector.load %arg2[%c0_1, %c0_2] : memref<32x128xf32, #tpu.memory_space<vmem>>, vector<32x128xf32>
    %c0_3 = arith.constant 0 : index
    %c0_4 = arith.constant 0 : index
    %2 = vector.load %arg3[%c0_3, %c0_4] : memref<1x128xf32, #tpu.memory_space<vmem>>, vector<1x128xf32>
    %c0_5 = arith.constant 0 : index
    %c0_6 = arith.constant 0 : index
    %3 = vector.load %arg4[%c0_5, %c0_6] : memref<128x128xf32, #tpu.memory_space<vmem>>, vector<128x128xf32>
    %c0_7 = arith.constant 0 : index
    %c0_8 = arith.constant 0 : index
    %4 = vector.load %arg5[%c0_7, %c0_8] : memref<1x128xf32, #tpu.memory_space<vmem>>, vector<1x128xf32>
    %c0_9 = arith.constant 0 : index
    %c0_10 = arith.constant 0 : index
    %5 = vector.load %arg6[%c0_9, %c0_10] : memref<128x32xf32, #tpu.memory_space<vmem>>, vector<128x32xf32>
    %c0_11 = arith.constant 0 : index
    %c0_12 = arith.constant 0 : index
    %6 = vector.load %arg7[%c0_11, %c0_12] : memref<1x32xf32, #tpu.memory_space<vmem>>, vector<1x32xf32>
    %cst = arith.constant dense<0.000000e+00> : vector<128x128xf32>
    %7 = tpu.matmul %0, %1, %cst {dimension_numbers = #tpu.dot_dimension_numbers<[1], [0], [0], [1], [0, 0, 1, 1], [], []>} : vector<128x32xf32>, vector<32x128xf32>, vector<128x128xf32> -> vector<128x128xf32>
    %8 = vector.broadcast %2 : vector<1x128xf32> to vector<128x128xf32>
    %9 = arith.addf %7, %8 : vector<128x128xf32>
    %cst_13 = arith.constant 0.000000e+00 : f32
    %10 = vector.broadcast %cst_13 : f32 to vector<128x128xf32>
    %11 = arith.maximumf %9, %10 : vector<128x128xf32>
    %cst_14 = arith.constant dense<0.000000e+00> : vector<128x128xf32>
    %12 = tpu.matmul %11, %3, %cst_14 {dimension_numbers = #tpu.dot_dimension_numbers<[1], [0], [0], [1], [0, 0, 1, 1], [], []>} : vector<128x128xf32>, vector<128x128xf32>, vector<128x128xf32> -> vector<128x128xf32>
    %13 = vector.broadcast %4 : vector<1x128xf32> to vector<128x128xf32>
    %14 = arith.addf %12, %13 : vector<128x128xf32>
    %cst_15 = arith.constant 0.000000e+00 : f32
    %15 = vector.broadcast %cst_15 : f32 to vector<128x128xf32>
    %16 = arith.maximumf %14, %15 : vector<128x128xf32>
    %cst_16 = arith.constant dense<0.000000e+00> : vector<128x32xf32>
    %17 = tpu.matmul %16, %5, %cst_16 {dimension_numbers = #tpu.dot_dimension_numbers<[1], [0], [0], [1], [0, 0, 1, 1], [], []>} : vector<128x128xf32>, vector<128x32xf32>, vector<128x32xf32> -> vector<128x32xf32>
    %18 = vector.broadcast %6 : vector<1x32xf32> to vector<128x32xf32>
    %19 = arith.addf %17, %18 : vector<128x32xf32>
    %20 = arith.mulf %19, %19 : vector<128x32xf32>
    %cst_17 = arith.constant dense<0.000000e+00> : vector<128xf32>
    %21 = vector.multi_reduction <add>, %20, %cst_17 [1] : vector<128x32xf32> to vector<128xf32>
    %22 = vector.shape_cast %21 : vector<128xf32> to vector<128x1xf32>
    %23 = math.rsqrt %22 : vector<128x1xf32>
    %24 = vector.broadcast %23 : vector<128x1xf32> to vector<128x32xf32>
    %25 = arith.mulf %19, %24 : vector<128x32xf32>
    %c0_18 = arith.constant 0 : index
    %c0_19 = arith.constant 0 : index
    %26 = vector.load %arg8[%c0_18, %c0_19] : memref<32x32xf32, #tpu.memory_space<vmem>>, vector<32x32xf32>
    %cst_20 = arith.constant 0.000000e+00 : f32
    %27 = vector.broadcast %cst_20 : f32 to vector<32x32xf32>
    %28 = arith.maximumf %26, %27 : vector<32x32xf32>
    %29 = vector.broadcast %cst_20 : f32 to vector<32x32xf32>
    %30 = arith.subf %26, %29 : vector<32x32xf32>
    %31 = arith.cmpf one, %30, %30 : vector<32x32xf32>
    %32 = vector.broadcast %cst_20 : f32 to vector<32x32xf32>
    %33 = arith.addf %26, %32 : vector<32x32xf32>
    %34 = math.absf %30 : vector<32x32xf32>
    %cst_21 = arith.constant 0.000000e+00 : f32
    %35 = vector.broadcast %cst_21 : f32 to vector<32x32xf32>
    %36 = arith.subf %35, %34 : vector<32x32xf32>
    %37 = math.exp %36 : vector<32x32xf32>
    %38 = math.log1p %37 : vector<32x32xf32>
    %39 = arith.addf %28, %38 : vector<32x32xf32>
    %40 = arith.select %31, %33, %39 : vector<32x32xi1>, vector<32x32xf32>
    %cst_22 = arith.constant dense<0.000000e+00> : vector<128x32xf32>
    %41 = tpu.matmul %25, %40, %cst_22 {dimension_numbers = #tpu.dot_dimension_numbers<[1], [0], [0], [1], [0, 0, 1, 1], [], []>} : vector<128x32xf32>, vector<32x32xf32>, vector<128x32xf32> -> vector<128x32xf32>
    %c0_23 = arith.constant 0 : index
    %c0_24 = arith.constant 0 : index
    %42 = vector.load %arg9[%c0_23, %c0_24] : memref<128x32xf32, #tpu.memory_space<vmem>>, vector<128x32xf32>
    tpu.vector_store %arg9[%c0_23, %c0_24], %41 {strides = array<i32>} : memref<128x32xf32, #tpu.memory_space<vmem>>, vector<128x32xf32>,
    return
  }
  func.func @transform_0(%arg0: i32) -> (i32, i32) {
    %c0_i32 = arith.constant 0 : i32
    %c0_i32_0 = arith.constant 0 : i32
    return %arg0, %c0_i32 : i32, i32
  }
  func.func @transform_1(%arg0: i32) -> (i32, i32) {
    %c0_i32 = arith.constant 0 : i32
    %c0_i32_0 = arith.constant 0 : i32
    %c0_i32_1 = arith.constant 0 : i32
    return %c0_i32, %c0_i32_0 : i32, i32
  }
  func.func @transform_2(%arg0: i32) -> (i32, i32) {
    %c0_i32 = arith.constant 0 : i32
    %c0_i32_0 = arith.constant 0 : i32
    %c0_i32_1 = arith.constant 0 : i32
    return %c0_i32, %c0_i32_0 : i32, i32
  }
  func.func @transform_3(%arg0: i32) -> (i32, i32) {
    %c0_i32 = arith.constant 0 : i32
    %c0_i32_0 = arith.constant 0 : i32
    %c0_i32_1 = arith.constant 0 : i32
    return %c0_i32, %c0_i32_0 : i32, i32
  }
  func.func @transform_4(%arg0: i32) -> (i32, i32) {
    %c0_i32 = arith.constant 0 : i32
    %c0_i32_0 = arith.constant 0 : i32
    %c0_i32_1 = arith.constant 0 : i32
    return %c0_i32, %c0_i32_0 : i32, i32
  }
  func.func @transform_5(%arg0: i32) -> (i32, i32) {
    %c0_i32 = arith.constant 0 : i32
    %c0_i32_0 = arith.constant 0 : i32
    %c0_i32_1 = arith.constant 0 : i32
    return %c0_i32, %c0_i32_0 : i32, i32
  }
  func.func @transform_6(%arg0: i32) -> (i32, i32) {
    %c0_i32 = arith.constant 0 : i32
    %c0_i32_0 = arith.constant 0 : i32
    %c0_i32_1 = arith.constant 0 : i32
    return %c0_i32, %c0_i32_0 : i32, i32
  }
  func.func @transform_7(%arg0: i32) -> (i32, i32) {
    %c0_i32 = arith.constant 0 : i32
    %c0_i32_0 = arith.constant 0 : i32
    %c0_i32_1 = arith.constant 0 : i32
    return %c0_i32, %c0_i32_0 : i32, i32
  }
  func.func @transform_8(%arg0: i32) -> (i32, i32) {
    %c0_i32 = arith.constant 0 : i32
    %c0_i32_0 = arith.constant 0 : i32
    return %arg0, %c0_i32 : i32, i32
  }
}

module attributes {stable_mosaic.version = 11 : i64} {
  func.func @_logits_kernel(%arg0: i32, %arg1: memref<8x32xf32, #tpu.memory_space<vmem>>, %arg2: memref<128x32xf32, #tpu.memory_space<vmem>>, %arg3: memref<32x128xf32, #tpu.memory_space<vmem>>, %arg4: memref<1x128xf32, #tpu.memory_space<vmem>>, %arg5: memref<128x128xf32, #tpu.memory_space<vmem>>, %arg6: memref<1x128xf32, #tpu.memory_space<vmem>>, %arg7: memref<128x32xf32, #tpu.memory_space<vmem>>, %arg8: memref<1x32xf32, #tpu.memory_space<vmem>>, %arg9: memref<32x32xf32, #tpu.memory_space<vmem>>, %arg10: memref<8x128xf32, #tpu.memory_space<vmem>>) attributes {dimension_semantics = [#tpu.dimension_semantics<parallel>], iteration_bounds = array<i64: 1>, scalar_prefetch = 0 : i64, scratch_operands = 0 : i64, tpu.core_type = #tpu.core_type<tc>, window_params = [{transform_indices = @transform_0, window_bounds = array<i64: 8, 32>}, {pipeline_mode = #tpu.pipeline_mode<synchronous>, transform_indices = @transform_1, window_bounds = array<i64: 128, 32>}, {pipeline_mode = #tpu.pipeline_mode<synchronous>, transform_indices = @transform_2, window_bounds = array<i64: 32, 128>}, {pipeline_mode = #tpu.pipeline_mode<synchronous>, transform_indices = @transform_3, window_bounds = array<i64: 1, 128>}, {pipeline_mode = #tpu.pipeline_mode<synchronous>, transform_indices = @transform_4, window_bounds = array<i64: 128, 128>}, {pipeline_mode = #tpu.pipeline_mode<synchronous>, transform_indices = @transform_5, window_bounds = array<i64: 1, 128>}, {pipeline_mode = #tpu.pipeline_mode<synchronous>, transform_indices = @transform_6, window_bounds = array<i64: 128, 32>}, {pipeline_mode = #tpu.pipeline_mode<synchronous>, transform_indices = @transform_7, window_bounds = array<i64: 1, 32>}, {pipeline_mode = #tpu.pipeline_mode<synchronous>, transform_indices = @transform_8, window_bounds = array<i64: 32, 32>}, {transform_indices = @transform_9, window_bounds = array<i64: 8, 128>}]} {
    %c0 = arith.constant 0 : index
    %c0_0 = arith.constant 0 : index
    %0 = vector.load %arg1[%c0, %c0_0] : memref<8x32xf32, #tpu.memory_space<vmem>>, vector<8x32xf32>
    %c0_1 = arith.constant 0 : index
    %c0_2 = arith.constant 0 : index
    %1 = vector.load %arg3[%c0_1, %c0_2] : memref<32x128xf32, #tpu.memory_space<vmem>>, vector<32x128xf32>
    %c0_3 = arith.constant 0 : index
    %c0_4 = arith.constant 0 : index
    %2 = vector.load %arg4[%c0_3, %c0_4] : memref<1x128xf32, #tpu.memory_space<vmem>>, vector<1x128xf32>
    %c0_5 = arith.constant 0 : index
    %c0_6 = arith.constant 0 : index
    %3 = vector.load %arg5[%c0_5, %c0_6] : memref<128x128xf32, #tpu.memory_space<vmem>>, vector<128x128xf32>
    %c0_7 = arith.constant 0 : index
    %c0_8 = arith.constant 0 : index
    %4 = vector.load %arg6[%c0_7, %c0_8] : memref<1x128xf32, #tpu.memory_space<vmem>>, vector<1x128xf32>
    %c0_9 = arith.constant 0 : index
    %c0_10 = arith.constant 0 : index
    %5 = vector.load %arg7[%c0_9, %c0_10] : memref<128x32xf32, #tpu.memory_space<vmem>>, vector<128x32xf32>
    %c0_11 = arith.constant 0 : index
    %c0_12 = arith.constant 0 : index
    %6 = vector.load %arg8[%c0_11, %c0_12] : memref<1x32xf32, #tpu.memory_space<vmem>>, vector<1x32xf32>
    %cst = arith.constant dense<0.000000e+00> : vector<8x128xf32>
    %7 = tpu.matmul %0, %1, %cst {dimension_numbers = #tpu.dot_dimension_numbers<[1], [0], [0], [1], [0, 0, 1, 1], [], []>} : vector<8x32xf32>, vector<32x128xf32>, vector<8x128xf32> -> vector<8x128xf32>
    %8 = vector.broadcast %2 : vector<1x128xf32> to vector<8x128xf32>
    %9 = arith.addf %7, %8 : vector<8x128xf32>
    %cst_13 = arith.constant 0.000000e+00 : f32
    %10 = vector.broadcast %cst_13 : f32 to vector<8x128xf32>
    %11 = arith.maximumf %9, %10 : vector<8x128xf32>
    %cst_14 = arith.constant dense<0.000000e+00> : vector<8x128xf32>
    %12 = tpu.matmul %11, %3, %cst_14 {dimension_numbers = #tpu.dot_dimension_numbers<[1], [0], [0], [1], [0, 0, 1, 1], [], []>} : vector<8x128xf32>, vector<128x128xf32>, vector<8x128xf32> -> vector<8x128xf32>
    %13 = vector.broadcast %4 : vector<1x128xf32> to vector<8x128xf32>
    %14 = arith.addf %12, %13 : vector<8x128xf32>
    %cst_15 = arith.constant 0.000000e+00 : f32
    %15 = vector.broadcast %cst_15 : f32 to vector<8x128xf32>
    %16 = arith.maximumf %14, %15 : vector<8x128xf32>
    %cst_16 = arith.constant dense<0.000000e+00> : vector<8x32xf32>
    %17 = tpu.matmul %16, %5, %cst_16 {dimension_numbers = #tpu.dot_dimension_numbers<[1], [0], [0], [1], [0, 0, 1, 1], [], []>} : vector<8x128xf32>, vector<128x32xf32>, vector<8x32xf32> -> vector<8x32xf32>
    %18 = vector.broadcast %6 : vector<1x32xf32> to vector<8x32xf32>
    %19 = arith.addf %17, %18 : vector<8x32xf32>
    %20 = arith.mulf %19, %19 : vector<8x32xf32>
    %cst_17 = arith.constant dense<0.000000e+00> : vector<8xf32>
    %21 = vector.multi_reduction <add>, %20, %cst_17 [1] : vector<8x32xf32> to vector<8xf32>
    %22 = vector.shape_cast %21 : vector<8xf32> to vector<8x1xf32>
    %23 = math.rsqrt %22 : vector<8x1xf32>
    %24 = vector.broadcast %23 : vector<8x1xf32> to vector<8x32xf32>
    %25 = arith.mulf %19, %24 : vector<8x32xf32>
    %c0_18 = arith.constant 0 : index
    %c0_19 = arith.constant 0 : index
    %26 = vector.load %arg9[%c0_18, %c0_19] : memref<32x32xf32, #tpu.memory_space<vmem>>, vector<32x32xf32>
    %cst_20 = arith.constant 0.000000e+00 : f32
    %27 = vector.broadcast %cst_20 : f32 to vector<32x32xf32>
    %28 = arith.maximumf %26, %27 : vector<32x32xf32>
    %29 = vector.broadcast %cst_20 : f32 to vector<32x32xf32>
    %30 = arith.subf %26, %29 : vector<32x32xf32>
    %31 = arith.cmpf one, %30, %30 : vector<32x32xf32>
    %32 = vector.broadcast %cst_20 : f32 to vector<32x32xf32>
    %33 = arith.addf %26, %32 : vector<32x32xf32>
    %34 = math.absf %30 : vector<32x32xf32>
    %cst_21 = arith.constant 0.000000e+00 : f32
    %35 = vector.broadcast %cst_21 : f32 to vector<32x32xf32>
    %36 = arith.subf %35, %34 : vector<32x32xf32>
    %37 = math.exp %36 : vector<32x32xf32>
    %38 = math.log1p %37 : vector<32x32xf32>
    %39 = arith.addf %28, %38 : vector<32x32xf32>
    %40 = arith.select %31, %33, %39 : vector<32x32xi1>, vector<32x32xf32>
    %cst_22 = arith.constant dense<0.000000e+00> : vector<8x32xf32>
    %41 = tpu.matmul %25, %40, %cst_22 {dimension_numbers = #tpu.dot_dimension_numbers<[1], [0], [0], [1], [0, 0, 1, 1], [], []>} : vector<8x32xf32>, vector<32x32xf32>, vector<8x32xf32> -> vector<8x32xf32>
    %c0_23 = arith.constant 0 : index
    %c0_24 = arith.constant 0 : index
    %42 = vector.load %arg2[%c0_23, %c0_24] : memref<128x32xf32, #tpu.memory_space<vmem>>, vector<128x32xf32>
    %cst_25 = arith.constant dense<0.000000e+00> : vector<8x128xf32>
    %43 = tpu.matmul %41, %42, %cst_25 {dimension_numbers = #tpu.dot_dimension_numbers<[1], [1], [0], [0], [0, 0, 1, 0], [], []>} : vector<8x32xf32>, vector<128x32xf32>, vector<8x128xf32> -> vector<8x128xf32>
    %44 = tpu.iota {dimensions = array<i32: 1>} : vector<8x128xi32>
    %c8_i32 = arith.constant 8 : i32
    %45 = vector.broadcast %c8_i32 : i32 to vector<8x128xi32>
    %46 = arith.cmpi slt, %44, %45 : vector<8x128xi32>
    %cst_26 = arith.constant 0xFF800000 : f32
    %47 = vector.broadcast %cst_26 : f32 to vector<8x128xf32>
    %48 = arith.select %46, %43, %47 : vector<8x128xi1>, vector<8x128xf32>
    %cst_27 = arith.constant dense<0xFF800000> : vector<8xf32>
    %49 = vector.multi_reduction <maximumf>, %48, %cst_27 [1] : vector<8x128xf32> to vector<8xf32>
    %50 = vector.shape_cast %49 : vector<8xf32> to vector<8x1xf32>
    %51 = vector.broadcast %50 : vector<8x1xf32> to vector<8x128xf32>
    %52 = arith.subf %43, %51 : vector<8x128xf32>
    %c0_28 = arith.constant 0 : index
    %c0_29 = arith.constant 0 : index
    %53 = vector.load %arg10[%c0_28, %c0_29] : memref<8x128xf32, #tpu.memory_space<vmem>>, vector<8x128xf32>
    tpu.vector_store %arg10[%c0_28, %c0_29], %52 {strides = array<i32>} : memref<8x128xf32, #tpu.memory_space<vmem>>, vector<8x128xf32>,
    return
  }
  func.func @transform_0(%arg0: i32) -> (i32, i32) {
    %c0_i32 = arith.constant 0 : i32
    %c0_i32_0 = arith.constant 0 : i32
    return %arg0, %c0_i32 : i32, i32
  }
  func.func @transform_1(%arg0: i32) -> (i32, i32) {
    %c0_i32 = arith.constant 0 : i32
    %c0_i32_0 = arith.constant 0 : i32
    %c0_i32_1 = arith.constant 0 : i32
    return %c0_i32, %c0_i32_0 : i32, i32
  }
  func.func @transform_2(%arg0: i32) -> (i32, i32) {
    %c0_i32 = arith.constant 0 : i32
    %c0_i32_0 = arith.constant 0 : i32
    %c0_i32_1 = arith.constant 0 : i32
    return %c0_i32, %c0_i32_0 : i32, i32
  }
  func.func @transform_3(%arg0: i32) -> (i32, i32) {
    %c0_i32 = arith.constant 0 : i32
    %c0_i32_0 = arith.constant 0 : i32
    %c0_i32_1 = arith.constant 0 : i32
    return %c0_i32, %c0_i32_0 : i32, i32
  }
  func.func @transform_4(%arg0: i32) -> (i32, i32) {
    %c0_i32 = arith.constant 0 : i32
    %c0_i32_0 = arith.constant 0 : i32
    %c0_i32_1 = arith.constant 0 : i32
    return %c0_i32, %c0_i32_0 : i32, i32
  }
  func.func @transform_5(%arg0: i32) -> (i32, i32) {
    %c0_i32 = arith.constant 0 : i32
    %c0_i32_0 = arith.constant 0 : i32
    %c0_i32_1 = arith.constant 0 : i32
    return %c0_i32, %c0_i32_0 : i32, i32
  }
  func.func @transform_6(%arg0: i32) -> (i32, i32) {
    %c0_i32 = arith.constant 0 : i32
    %c0_i32_0 = arith.constant 0 : i32
    %c0_i32_1 = arith.constant 0 : i32
    return %c0_i32, %c0_i32_0 : i32, i32
  }
  func.func @transform_7(%arg0: i32) -> (i32, i32) {
    %c0_i32 = arith.constant 0 : i32
    %c0_i32_0 = arith.constant 0 : i32
    %c0_i32_1 = arith.constant 0 : i32
    return %c0_i32, %c0_i32_0 : i32, i32
  }
  func.func @transform_8(%arg0: i32) -> (i32, i32) {
    %c0_i32 = arith.constant 0 : i32
    %c0_i32_0 = arith.constant 0 : i32
    %c0_i32_1 = arith.constant 0 : i32
    return %c0_i32, %c0_i32_0 : i32, i32
  }
  func.func @transform_9(%arg0: i32) -> (i32, i32) {
    %c0_i32 = arith.constant 0 : i32
    %c0_i32_0 = arith.constant 0 : i32
    return %arg0, %c0_i32 : i32, i32
  }
}

</mosaic_0001>

<bundles_post_ra>
// kernel: contrastive_pd_forward.3
= control target key start
LH: loop header
LB: loop body
LE: loop exit
PB: predicated region body
PF: predicated region fallthrough
CT: control target
= control target key end

     0   :  { %vm76_vm0 = vcmask 261120   ;;  %s720_s0 = inlined_call_operand.vmem [shape: f32[8,32], index: 0, kind: input, shape index: {}]   ;;  %s721_s1 = inlined_call_operand.vmem [shape: f32[128,32], index: 1, kind: input, shape index: {}]   ;;  %s722_s2 = inlined_call_operand.vmem [shape: f32[32,128], index: 2, kind: input, shape index: {}]   ;;  %s723_s3 = inlined_call_operand.vmem [shape: f32[1,128], index: 3, kind: input, shape index: {}]   ;;  %s724_s4 = inlined_call_operand.vmem [shape: f32[128,128], index: 4, kind: input, shape index: {}]   ;;  %s725_s5 = inlined_call_operand.vmem [shape: f32[1,128], index: 5, kind: input, shape index: {}]   ;;  %s726_s6 = inlined_call_operand.vmem [shape: f32[128,32], index: 6, kind: input, shape index: {}]   ;;  %s727_s7 = inlined_call_operand.vmem [shape: f32[1,32], index: 7, kind: input, shape index: {}]   ;;  %s728_s8 = inlined_call_operand.vmem [shape: f32[32,32], index: 8, kind: input, shape index: {}]   ;;  %s729_s9 = inlined_call_operand.hbm [shape: f32[8,128], index: 9, kind: output, shape index: {}]  }
   0x1   :  { %v37_v0 = vld [vmem:[%s722_s2 + $0x18] sm:$0xff]  ;;  %v36_v1 = vld [vmem:[%s722_s2 + $0x10] sm:$0xff]  ;;  %v35_v3 = vld [vmem:[%s722_s2 + $0x8] sm:$0xff] }
   0x2   :  { %92 = vmatpush.msra.mxu3 %v37_v0  ;;  %v54_v2 = vld [vmem:[%s724_s4 + $0x78] sm:$0xff]  ;;  %v53_v4 = vld [vmem:[%s724_s4 + $0x70] sm:$0xff]  ;;  %v52_v5 = vld [vmem:[%s724_s4 + $0x68] sm:$0xff] }
   0x3   :  { %104 = vmatpush.msra.mxu1 %v54_v2  ;;  %v34_v6 = vld [vmem:[%s722_s2] sm:$0xff]  ;;  %v50_v9 = vld [vmem:[%s724_s4 + $0x58] sm:$0xff] }
   0x4   :  { %93 = vmatpush.msra.mxu3 %v36_v1  ;;  %v33_v7 = vld [vmem:[%s720_s0] sm:$0xff] }
   0x5   :  { %105 = vmatpush.msra.mxu1 %v53_v4  ;;  %v51_v8 = vld [vmem:[%s724_s4 + $0x60] sm:$0xff] }
   0x6   :  { %94 = vmatpush.msra.mxu3 %v35_v3 }
   0x7   :  { %106 = vmatpush.msra.mxu1 %v52_v5 }
   0x8   :  { %95 = vmatpush.msra.mxu3 %v34_v6 }
   0x9   :  { %14 = vsyncpa [#allocation3], 0  ;;  %373 = vmatmul.msk.f32.vlgmr.msra.gmra.mxu3 %vm76_vm0, %v33_v7  ;;  %107 = vmatpush.msra.mxu1 %v51_v8  ;;  %v49_v10 = vld [vmem:[%s724_s4 + $0x50] sm:$0xff]  ;;  %v48_v11 = vld [vmem:[%s724_s4 + $0x48] sm:$0xff]  ;;  %s440_s24 = smov [#allocation2]   ;;  %s364_s28 = sshll.u32 %s729_s9, 4  ;;  %s365_s28 = int_to_ptr.hbm [resolvable:$true] %s364_s28 }
   0xa   :  { %v47_v12 = vld [vmem:[%s724_s4 + $0x40] sm:$0xff]  ;;  %v46_v13 = vld [vmem:[%s724_s4 + $0x38] sm:$0xff]  ;;  %v45_v14 = vld [vmem:[%s724_s4 + $0x30] sm:$0xff]  ;;  %s362_s25 = sshll.u32 %s440_s24, 4  ;;  %s363_s25 = int_to_ptr.vmem [resolvable:$true] %s362_s25 }
   0xb   :  { %108 = vmatpush.msra.mxu1 %v50_v9  ;;  %v44_v15 = vld [vmem:[%s724_s4 + $0x28] sm:$0xff]  ;;  %v43_v16 = vld [vmem:[%s724_s4 + $0x20] sm:$0xff]  ;;  %v42_v17 = vld [vmem:[%s724_s4 + $0x18] sm:$0xff] }
   0xc   :  { %v41_v18 = vld [vmem:[%s724_s4 + $0x10] sm:$0xff]  ;;  %v40_v19 = vld [vmem:[%s724_s4 + $0x8] sm:$0xff]  ;;  %v39_v20 = vld [vmem:[%s724_s4] sm:$0xff] }
   0xd   :  { %109 = vmatpush.msra.mxu1 %v49_v10  ;;  %v71_v21 = vld [vmem:[%s726_s6 + $0x78] sm:$0xff]  ;;  %v70_v22 = vld [vmem:[%s726_s6 + $0x70] sm:$0xff]  ;;  %v69_v23 = vld [vmem:[%s726_s6 + $0x68] sm:$0xff] }
   0xe   :  { %128 = vmatpush.msra.mxu2 %v71_v21  ;;  %v68_v24 = vld [vmem:[%s726_s6 + $0x60] sm:$0xff]  ;;  %v67_v25 = vld [vmem:[%s726_s6 + $0x58] sm:$0xff]  ;;  %v66_v26 = vld [vmem:[%s726_s6 + $0x50] sm:$0xff] }
   0xf   :  { %110 = vmatpush.msra.mxu1 %v48_v11  ;;  %v65_v27 = vld [vmem:[%s726_s6 + $0x48] sm:$0xff]  ;;  %v64_v28 = vld [vmem:[%s726_s6 + $0x40] sm:$0xff]  ;;  %v63_v29 = vld [vmem:[%s726_s6 + $0x38] sm:$0xff] }
  0x10   :  { %129 = vmatpush.msra.mxu2 %v70_v22  ;;  %v62_v30 = vld [vmem:[%s726_s6 + $0x30] sm:$0xff]  ;;  %v61_v31 = vld [vmem:[%s726_s6 + $0x28] sm:$0xff]  ;;  %v60_v32 = vld [vmem:[%s726_s6 + $0x20] sm:$0xff] }
  0x11   :  { %111 = vmatpush.msra.mxu1 %v47_v12  ;;  %v59_v33 = vld [vmem:[%s726_s6 + $0x18] sm:$0xff]  ;;  %v393_v34 = vld [vmem:[%s723_s3] ss:$0 sm:$0xff]  ;;  %v58_v38 = vld [vmem:[%s726_s6 + $0x10] sm:$0xff] }
  0x12   :  { %130 = vmatpush.msra.mxu2 %v69_v23  ;;  %v57_v39 = vld [vmem:[%s726_s6 + $0x8] sm:$0xff]  ;;  %v56_v40 = vld [vmem:[%s726_s6] sm:$0xff]  ;;  %v166_v50 = vld [vmem:[%s728_s8 + $0x18] sm:$0xff] }
  0x13   :  { %112 = vmatpush.msra.mxu1 %v46_v13  ;;  %v394_v41 = vld [vmem:[%s725_s5] ss:$0 sm:$0xff]  ;;  %v182_v51 = vand.u32 2147483647, %v166_v50  ;;  %v623_v52 = vld [vmem:[%s728_s8 + $0x10] sm:$0xff]  ;;  %v629_v55 = vld [vmem:[%s728_s8 + $0x8] sm:$0xff]  ;;  %vm174_vm3 = vcmp.ne.f32.partialorder %v166_v50, %v166_v50 }
  0x14   :  { %131 = vmatpush.msra.mxu2 %v68_v24  ;;  %v395_v45 = vld [vmem:[%s727_s7] ss:$0 sm:$0xff]  ;;  %v181_v54 = vand.u32 2147483647, %v623_v52  ;;  %v180_v58 = vand.u32 2147483647, %v629_v55  ;;  %vm173_vm5 = vcmp.ne.f32.partialorder %v623_v52, %v623_v52  ;;  %vm172_vm6 = vcmp.ne.f32.partialorder %v629_v55, %v629_v55 }
  0x15   :  { %113 = vmatpush.msra.mxu1 %v45_v14  ;;  %v186_v53 = vsub.f32 0.0, %v182_v51  ;;  %v635_v59 = vld [vmem:[%s728_s8] sm:$0xff] }
  0x16   :  { %132 = vmatpush.msra.mxu2 %v67_v25  ;;  %v185_v57 = vsub.f32 0.0, %v181_v54  ;;  %v184_v61 = vsub.f32 0.0, %v180_v58  ;;  %v179_v62 = vand.u32 2147483647, %v635_v59  ;;  %vm171_vm8 = vcmp.ne.f32.partialorder %v635_v59, %v635_v59  ;;  %v274_v54 = vld [vmem:[%s721_s1 + $0x60] sm:$0xff]  ;;  %v272_v58 = vld [vmem:[%s721_s1 + $0x50] sm:$0xff] }
  0x17   :  { %114 = vmatpush.msra.mxu1 %v44_v15  ;;  %v193_v56 = vmul.f32 1.442695, %v186_v53  ;;  %v275_v53 = vld [vmem:[%s721_s1 + $0x68] sm:$0xff] }
  0x18   :  { %133 = vmatpush.msra.mxu2 %v66_v26  ;;  %v191_v60 = vmul.f32 1.442695, %v185_v57  ;;  %v189_v63 = vmul.f32 1.442695, %v184_v61  ;;  %v183_v0 = vsub.f32 0.0, %v179_v62  ;;  %v271_v61 = vld [vmem:[%s721_s1 + $0x48] sm:$0xff] }
  0x19   :  { %115 = vmatpush.msra.mxu1 %v43_v16  ;;  %396 = vpow2.f32 %v193_v56  ;;  %v273_v56 = vld [vmem:[%s721_s1 + $0x58] sm:$0xff] }
  0x1a   :  { %134 = vmatpush.msra.mxu2 %v65_v27  ;;  %398 = vpow2.f32 %v191_v60  ;;  %v187_v1 = vmul.f32 1.442695, %v183_v0  ;;  %v270_v0 = vld [vmem:[%s721_s1 + $0x40] sm:$0xff] }
  0x1b   :  { %116 = vmatpush.msra.mxu1 %v42_v17  ;;  %400 = vpow2.f32 %v189_v63 }
  0x1c   :  { %135 = vmatpush.msra.mxu2 %v64_v28  ;;  %402 = vpow2.f32 %v187_v1  ;;  %v169_v28 = vmax.f32 %v623_v52, 0.0 }
  0x1d   :  { %117 = vmatpush.msra.mxu1 %v41_v18 }
  0x1e   :  { %136 = vmatpush.msra.mxu2 %v63_v29 }
  0x1f   :  { %118 = vmatpush.msra.mxu1 %v40_v19  ;;  %v397_v2 = vpop.eup %396 }
  0x20   :  { %137 = vmatpush.msra.mxu2 %v62_v30  ;;  %v222_v3 = vadd.f32 1.0, %v397_v2  ;;  %v399_v4 = vpop.eup %398  ;;  %v225_v9 = vmul.f32 -0.5, %v397_v2  ;;  %v228_v14 = vand.u32 2147483647, %v397_v2 }
  0x21   :  { %119 = vmatpush.msra.mxu1 %v39_v20  ;;  %v213_v5 = vadd.f32 1.0, %v399_v4  ;;  %v401_v6 = vpop.eup %400  ;;  %v216_v12 = vmul.f32 -0.5, %v399_v4  ;;  %v170_v20 = vmax.f32 %v166_v50, 0.0  ;;  %v219_v21 = vand.u32 2147483647, %v399_v4 }
  0x22   :  { %138 = vmatpush.msra.mxu2 %v61_v31  ;;  %404 = vlog2.f32 %v222_v3  ;;  %v204_v7 = vadd.f32 1.0, %v401_v6  ;;  %v403_v8 = vpop.eup %402  ;;  %v226_v11 = vadd.f32 1.0, %v225_v9  ;;  %v207_v18 = vmul.f32 -0.5, %v401_v6  ;;  %v263_v9 = vld [vmem:[%s721_s1 + $0x8] sm:$0xff] }
  0x23   :  { %406 = vlog2.f32 %v213_v5  ;;  %v195_v10 = vadd.f32 1.0, %v403_v8  ;;  %v217_v17 = vadd.f32 1.0, %v216_v12  ;;  %vm229_vm1 = vcmp.lt.f32.partialorder %v228_v14, 0.0004427343  ;;  %v268_v5 = vld [vmem:[%s721_s1 + $0x30] sm:$0xff] }
  0x24   :  { %139 = vmatpush.msra.mxu2 %v60_v32  ;;  %408 = vlog2.f32 %v204_v7  ;;  %v227_v16 = vmul.f32 %v397_v2, %v226_v11  ;;  %v208_v25 = vadd.f32 1.0, %v207_v18  ;;  %vm220_vm2 = vcmp.lt.f32.partialorder %v219_v21, 0.0004427343  ;;  %v265_v7 = vld [vmem:[%s721_s1 + $0x18] sm:$0xff] }
  0x25   :  { %410 = vlog2.f32 %v195_v10  ;;  %v218_v24 = vmul.f32 %v399_v4, %v217_v17  ;;  %v210_v29 = vand.u32 2147483647, %v401_v6  ;;  %v269_v4 = vld [vmem:[%s721_s1 + $0x38] sm:$0xff]  ;;  %v262_v10 = vld [vmem:[%s721_s1] sm:$0xff]  ;;  %v349_v12 = vlaneseq }
  0x26   :  { %140 = vmatpush.msra.mxu2 %v59_v33  ;;  %v209_v32 = vmul.f32 %v401_v6, %v208_v25  ;;  %v267_v6 = vld [vmem:[%s721_s1 + $0x28] sm:$0xff] }
  0x27   :  { %vm211_vm4 = vcmp.lt.f32.partialorder %v210_v29, 0.0004427343 }
  0x28   :  { %141 = vmatpush.msra.mxu2 %v58_v38  ;;  %v405_v13 = vpop.eup %404  ;;  %v198_v38 = vmul.f32 -0.5, %v403_v8 }
  0x29   :  { %v224_v15 = vmul.f32 0.6931472, %v405_v13  ;;  %v407_v19 = vpop.eup %406  ;;  %v350_v13 = vand.u32 127, %v349_v12 }
  0x2a   :  { %142 = vmatpush.msra.mxu2 %v57_v39  ;;  %v215_v23 = vmul.f32 0.6931472, %v407_v19  ;;  %v409_v26 = vpop.eup %408 }
  0x2b   :  { %v230_v22 = vsel %vm229_vm1, %v227_v16, %v224_v15  ;;  %v206_v31 = vmul.f32 0.6931472, %v409_v26  ;;  %v411_v33 = vpop.eup %410  ;;  %vm351_vm12 = vcmp.lt.s32.totalorder %v350_v13, 8 }
  0x2c   :  { %143 = vmatpush.msra.mxu2 %v56_v40  ;;  %v234_v27 = vadd.f32 %v230_v22, %v170_v20  ;;  %v221_v30 = vsel %vm220_vm2, %v218_v24, %v215_v23 }
  0x8c   :  { %v97_v35 = vpop.f32.mrf.mxu3 }
  0x8d   :  { %v98_v36 = vadd.f32 %v393_v34, %v97_v35  ;;  %v238_v34 = vsel %vm174_vm3, %v166_v50, %v234_v27  ;;  %v233_v35 = vadd.f32 %v221_v30, %v169_v28  ;;  %v277_v50 = vld [vmem:[%s721_s1 + $0x78] sm:$0xff] }
  0x8e   :  { %254 = vmatpush.msrb.mxu3 %v238_v34  ;;  %375 = vmatpush.xpose.msk.msra.mxu0 %vm76_vm0, %v277_v50 }
  0x8f   :  { %v100_v37 = vmax.f32 %v98_v36, 0.0  ;;  %v168_v36 = vmax.f32 %v629_v55, 0.0  ;;  %v237_v39 = vsel %vm173_vm5, %v623_v52, %v233_v35  ;;  %v276_v52 = vld [vmem:[%s721_s1 + $0x70] sm:$0xff] }
  0x90   :  { %255 = vmatpush.msrb.mxu3 %v237_v39 }
  0x91   :  { %120 = vmatmul.f32.vlgmr.msra.gmra.mxu1 %v100_v37  ;;  %v212_v37 = vsel %vm211_vm4, %v209_v32, %v206_v31 }
  0x92   :  { %v232_v40 = vadd.f32 %v212_v37, %v168_v36  ;;  %376 = vmatpush.xpose.msk.msra.mxu0 %vm76_vm0, %v276_v52 }
  0x96   :  { %377 = vmatpush.xpose.msk.msra.mxu0 %vm76_vm0, %v275_v53 }
  0x9a   :  { %378 = vmatpush.xpose.msk.msra.mxu0 %vm76_vm0, %v274_v54 }
  0x9e   :  { %379 = vmatpush.xpose.msk.msra.mxu0 %vm76_vm0, %v273_v56 }
  0xa2   :  { %380 = vmatpush.xpose.msk.msra.mxu0 %vm76_vm0, %v272_v58 }
  0xa6   :  { %381 = vmatpush.xpose.msk.msra.mxu0 %vm76_vm0, %v271_v61 }
  0xaa   :  { %382 = vmatpush.xpose.msk.msra.mxu0 %vm76_vm0, %v270_v0 }
  0xae   :  { %383 = vmatpush.xpose.msk.msra.mxu0 %vm76_vm0, %v269_v4 }
  0xb2   :  { %384 = vmatpush.xpose.msk.msra.mxu0 %vm76_vm0, %v268_v5 }
  0xb6   :  { %385 = vmatpush.xpose.msk.msra.mxu0 %vm76_vm0, %v267_v6 }
 0x10e   :  { %v121_v42 = vpop.f32.mrf.mxu1 }
 0x10f   :  { %v122_v43 = vadd.f32 %v394_v41, %v121_v42  ;;  %v201_v41 = vand.u32 2147483647, %v403_v8  ;;  %v197_v42 = vmul.f32 0.6931472, %v411_v33 }
 0x111   :  { %v124_v44 = vmax.f32 %v122_v43, 0.0  ;;  %v199_v43 = vadd.f32 1.0, %v198_v38  ;;  %vm202_vm7 = vcmp.lt.f32.partialorder %v201_v41, 0.0004427343 }
 0x113   :  { %144 = vmatmul.f32.vlgmr.msra.gmra.mxu2 %v124_v44  ;;  %v236_v44 = vsel %vm172_vm6, %v629_v55, %v232_v40 }
 0x114   :  { %256 = vmatpush.msrb.mxu3 %v236_v44 }
 0x196   :  { %v145_v46 = vpop.f32.mrf.mxu2 }
 0x197   :  { %v612_v47 = vadd.f32 %v395_v45, %v145_v46  ;;  %v167_v45 = vmax.f32 %v635_v59, 0.0  ;;  %v200_v46 = vmul.f32 %v403_v8, %v199_v43  ;;  %v264_v8 = vld [vmem:[%s721_s1 + $0x10] sm:$0xff] }
 0x199   :  { %v148_v48 = vmul.f32 %v612_v47, %v612_v47 }
 0x19b   :  { %v149_v49 = vsel %vm76_vm0, %v148_v48, 0.0  ;;  %v203_v48 = vsel %vm202_vm7, %v200_v46, %v197_v42 }
 0x19c   :  { %150 = vadd.xlane.f32.xlu0 %v149_v49  ;;  %v231_v49 = vadd.f32 %v203_v48, %v167_v45 }
 0x19e   :  { %v235_v51 = vsel %vm171_vm8, %v635_v59, %v231_v49 }
 0x19f   :  { %257 = vmatpush.msrb.mxu3 %v235_v51 }
 0x20f   :  { %v151_v55 = vpop.xlane.xlu0 %150 }
 0x210   :  { %412 = vrsqrt.f32 %v151_v55  ;;  %vm158_vm10 = vweird.f32 %v151_v55 }
 0x216   :  { %v413_v57 = vpop.eup %412 }
 0x217   :  { %v153_v59 = vmul.f32 %v413_v57, %v151_v55  ;;  %vm159_vm9 = vweird.f32 %v413_v57 }
 0x218   :  { %vm160_vm11 = vmor %vm158_vm10, %vm159_vm9 }
 0x219   :  { %v154_v60 = vmul.f32 %v413_v57, %v153_v59 }
 0x21b   :  { %v155_v62 = vmul.f32 0.5, %v154_v60 }
 0x21d   :  { %v156_v63 = vsub.f32 1.5, %v155_v62 }
 0x21f   :  { %v157_v1 = vmul.f32 %v413_v57, %v156_v63 }
 0x221   :  { %v161_v2 = vsel %vm160_vm11, %v413_v57, %v157_v1 }
 0x222   :  { %v162_v3 = vmul.f32 %v161_v2, %v612_v47  ;;  %v266_v47 = vld [vmem:[%s721_s1 + $0x20] sm:$0xff] }
 0x223   :  { %386 = vmatpush.xpose.msk.msra.mxu0 %vm76_vm0, %v266_v47 }
 0x224   :  { %374 = vmatmul.msk.f32.vlgmr.msrb.gmra.mxu3 %vm76_vm0, %v162_v3 }
 0x227   :  { %387 = vmatpush.xpose.msk.msra.mxu0 %vm76_vm0, %v265_v7 }
 0x22b   :  { %388 = vmatpush.xpose.msk.msra.mxu0 %vm76_vm0, %v264_v8 }
 0x22f   :  { %389 = vmatpush.xpose.msk.msra.mxu0 %vm76_vm0, %v263_v9 }
 0x233   :  { %390 = vmatpush.xpose.msk.msra.mxu0 %vm76_vm0, %v262_v10 }
 0x2a7   :  { %v259_v11 = vpop.f32.mrf.mxu3 }
 0x2a8   :  { %391 = vmatmul.msk.f32.vlgmr.msra.gmra.mxu0 %vm76_vm0, %v259_v11 }
 0x325   :  { %v346_v14 = vpop.f32.mrf.mxu0 }
 0x326   :  { %v352_v15 = vsel %vm351_vm12, %v346_v14, -inf }
 0x327   :  { %353 = vmax.xlane.f32.xlu0 %v352_v15 }
 0x39a   :  { %v354_v16 = vpop.xlane.xlu0 %353 }
 0x39b   :  { %v355_v17 = vsub.f32 %v346_v14, %v354_v16 }
 0x39d   :  { %356 = vst [vmem:[#allocation2] sm:$0xff] %v355_v17 }
 0x39e   :  { %367 = dma.vmem_to_hbm [thread:$0]  %s363_s25, 128, %s365_s28, [#allocation3]  }
 0x39f   :  { %438 = dma.done.wait [#allocation3], 128  }
 0x3a0   :  { %439 = vsyncadd [#allocation3], 4294967168 }
 0x3a1   :  { %372 = vsyncpa [#allocation3], 1 }

// kernel: contrastive_pd_forward.2
= control target key start
LH: loop header
LB: loop body
LE: loop exit
PB: predicated region body
PF: predicated region fallthrough
CT: control target
= control target key end

     0   :  { %vm87_vm0 = vcmask 261120   ;;  %s1413_s1 = inlined_call_operand.vmem [shape: f32[32,128], index: 1, kind: input, shape index: {}]   ;;  %s1414_s3 = inlined_call_operand.vmem [shape: f32[128,128], index: 3, kind: input, shape index: {}]   ;;  %s1415_s0 = inlined_call_operand.vmem [shape: f32[128,32], index: 0, kind: input, shape index: {}]   ;;  %s1416_s2 = inlined_call_operand.vmem [shape: f32[1,128], index: 2, kind: input, shape index: {}]   ;;  %s1417_s4 = inlined_call_operand.vmem [shape: f32[1,128], index: 4, kind: input, shape index: {}]   ;;  %s1418_s5 = inlined_call_operand.vmem [shape: f32[128,32], index: 5, kind: input, shape index: {}]   ;;  %s1419_s6 = inlined_call_operand.vmem [shape: f32[1,32], index: 6, kind: input, shape index: {}]   ;;  %s1420_s7 = inlined_call_operand.vmem [shape: f32[32,32], index: 7, kind: input, shape index: {}]   ;;  %s1421_s8 = inlined_call_operand.vmem [shape: f32[128,32], index: 8, kind: output, shape index: {}]  }
   0x1   :  { %v48_v0 = vld [vmem:[%s1413_s1 + $0x18] sm:$0xff]  ;;  %v47_v1 = vld [vmem:[%s1413_s1 + $0x10] sm:$0xff]  ;;  %v46_v3 = vld [vmem:[%s1413_s1 + $0x8] sm:$0xff] }
   0x2   :  { %148 = vmatpush.msra.mxu0 %v48_v0  ;;  %v65_v2 = vld [vmem:[%s1414_s3 + $0x78] sm:$0xff]  ;;  %v64_v4 = vld [vmem:[%s1414_s3 + $0x70] sm:$0xff]  ;;  %v45_v5 = vld [vmem:[%s1413_s1] sm:$0xff] }
   0x3   :  { %850 = vmatpush.msra.mxu1 %v65_v2  ;;  %v29_v6 = vld [vmem:[%s1415_s0] sm:$0xff]  ;;  %v63_v7 = vld [vmem:[%s1414_s3 + $0x68] sm:$0xff]  ;;  %v61_v9 = vld [vmem:[%s1414_s3 + $0x58] sm:$0xff] }
   0x4   :  { %149 = vmatpush.msra.mxu0 %v47_v1  ;;  %v62_v8 = vld [vmem:[%s1414_s3 + $0x60] sm:$0xff]  ;;  %v30_v10 = vld [vmem:[%s1415_s0 + $0x8] sm:$0xff]  ;;  %v60_v11 = vld [vmem:[%s1414_s3 + $0x50] sm:$0xff] }
   0x5   :  { %851 = vmatpush.msra.mxu1 %v64_v4  ;;  %v31_v12 = vld [vmem:[%s1415_s0 + $0x10] sm:$0xff]  ;;  %v59_v13 = vld [vmem:[%s1414_s3 + $0x48] sm:$0xff]  ;;  %v32_v14 = vld [vmem:[%s1415_s0 + $0x18] sm:$0xff] }
   0x6   :  { %150 = vmatpush.msra.mxu0 %v46_v3  ;;  %v58_v15 = vld [vmem:[%s1414_s3 + $0x40] sm:$0xff]  ;;  %v57_v17 = vld [vmem:[%s1414_s3 + $0x38] sm:$0xff]  ;;  %v34_v18 = vld [vmem:[%s1415_s0 + $0x28] sm:$0xff] }
   0x7   :  { %852 = vmatpush.msra.mxu1 %v63_v7  ;;  %v33_v16 = vld [vmem:[%s1415_s0 + $0x20] sm:$0xff]  ;;  %v56_v19 = vld [vmem:[%s1414_s3 + $0x30] sm:$0xff]  ;;  %v55_v21 = vld [vmem:[%s1414_s3 + $0x28] sm:$0xff] }
   0x8   :  { %151 = vmatpush.msra.mxu0 %v45_v5  ;;  %v35_v20 = vld [vmem:[%s1415_s0 + $0x30] sm:$0xff]  ;;  %v36_v22 = vld [vmem:[%s1415_s0 + $0x38] sm:$0xff]  ;;  %v54_v23 = vld [vmem:[%s1414_s3 + $0x20] sm:$0xff] }
   0x9   :  { %818 = vmatmul.msk.f32.vlgmr.msra.gmra.mxu0 %vm87_vm0, %v29_v6  ;;  %853 = vmatpush.msra.mxu1 %v62_v8  ;;  %v37_v24 = vld [vmem:[%s1415_s0 + $0x40] sm:$0xff]  ;;  %v53_v25 = vld [vmem:[%s1414_s3 + $0x18] sm:$0xff]  ;;  %v38_v26 = vld [vmem:[%s1415_s0 + $0x48] sm:$0xff] }
   0xa   :  { %220 = vmatpush.msrb.mxu0 %v65_v2  ;;  %v52_v27 = vld [vmem:[%s1414_s3 + $0x10] sm:$0xff]  ;;  %v51_v29 = vld [vmem:[%s1414_s3 + $0x8] sm:$0xff]  ;;  %v40_v30 = vld [vmem:[%s1415_s0 + $0x58] sm:$0xff] }
   0xb   :  { %854 = vmatpush.msra.mxu1 %v61_v9  ;;  %v39_v28 = vld [vmem:[%s1415_s0 + $0x50] sm:$0xff]  ;;  %v50_v31 = vld [vmem:[%s1414_s3] sm:$0xff]  ;;  %v42_v33 = vld [vmem:[%s1415_s0 + $0x68] sm:$0xff] }
   0xc   :  { %221 = vmatpush.msrb.mxu0 %v64_v4  ;;  %v41_v32 = vld [vmem:[%s1415_s0 + $0x60] sm:$0xff]  ;;  %v43_v34 = vld [vmem:[%s1415_s0 + $0x70] sm:$0xff]  ;;  %v44_v35 = vld [vmem:[%s1415_s0 + $0x78] sm:$0xff] }
   0xd   :  { %855 = vmatpush.msra.mxu1 %v60_v11  ;;  %v1089_v36 = vld [vmem:[%s1416_s2] ss:$0 sm:$0xff]  ;;  %v82_v0 = vld [vmem:[%s1418_s5 + $0x78] sm:$0xff]  ;;  %v81_v3 = vld [vmem:[%s1418_s5 + $0x70] sm:$0xff] }
   0xe   :  { %222 = vmatpush.msrb.mxu0 %v63_v7  ;;  %304 = vmatpush.msra.mxu2 %v82_v0  ;;  %v80_v5 = vld [vmem:[%s1418_s5 + $0x68] sm:$0xff]  ;;  %v79_v6 = vld [vmem:[%s1418_s5 + $0x60] sm:$0xff]  ;;  %v78_v7 = vld [vmem:[%s1418_s5 + $0x58] sm:$0xff] }
   0xf   :  { %856 = vmatpush.msra.mxu1 %v59_v13 }
  0x10   :  { %223 = vmatpush.msrb.mxu0 %v62_v8  ;;  %305 = vmatpush.msra.mxu2 %v81_v3 }
  0x11   :  { %819 = vmatmul.msk.f32.gmra.mxu0 %vm87_vm0, %v30_v10  ;;  %857 = vmatpush.msra.mxu1 %v58_v15  ;;  %v77_v10 = vld [vmem:[%s1418_s5 + $0x50] sm:$0xff] }
  0x12   :  { %224 = vmatpush.msrb.mxu0 %v61_v9  ;;  %306 = vmatpush.msra.mxu2 %v80_v5 }
  0x13   :  { %858 = vmatpush.msra.mxu1 %v57_v17 }
  0x14   :  { %225 = vmatpush.msrb.mxu0 %v60_v11  ;;  %307 = vmatpush.msra.mxu2 %v79_v6 }
  0x15   :  { %859 = vmatpush.msra.mxu1 %v56_v19 }
  0x16   :  { %226 = vmatpush.msrb.mxu0 %v59_v13  ;;  %308 = vmatpush.msra.mxu2 %v78_v7  ;;  %v75_v13 = vld [vmem:[%s1418_s5 + $0x40] sm:$0xff] }
  0x17   :  { %860 = vmatpush.msra.mxu1 %v55_v21 }
  0x18   :  { %227 = vmatpush.msrb.mxu0 %v58_v15  ;;  %309 = vmatpush.msra.mxu2 %v77_v10 }
  0x19   :  { %820 = vmatmul.msk.f32.gmra.mxu0 %vm87_vm0, %v31_v12  ;;  %861 = vmatpush.msra.mxu1 %v54_v23  ;;  %v76_v12 = vld [vmem:[%s1418_s5 + $0x48] sm:$0xff] }
  0x1a   :  { %228 = vmatpush.msrb.mxu0 %v57_v17  ;;  %310 = vmatpush.msra.mxu2 %v76_v12  ;;  %v73_v17 = vld [vmem:[%s1418_s5 + $0x30] sm:$0xff] }
  0x1b   :  { %862 = vmatpush.msra.mxu1 %v53_v25 }
  0x1c   :  { %229 = vmatpush.msrb.mxu0 %v56_v19  ;;  %311 = vmatpush.msra.mxu2 %v75_v13  ;;  %v72_v19 = vld [vmem:[%s1418_s5 + $0x28] sm:$0xff] }
  0x1d   :  { %863 = vmatpush.msra.mxu1 %v52_v27 }
  0x1e   :  { %230 = vmatpush.msrb.mxu0 %v55_v21  ;;  %v70_v21 = vld [vmem:[%s1418_s5 + $0x18] sm:$0xff] }
  0x1f   :  { %864 = vmatpush.msra.mxu1 %v51_v29 }
  0x20   :  { %231 = vmatpush.msrb.mxu0 %v54_v23 }
  0x21   :  { %821 = vmatmul.msk.f32.gmra.mxu0 %vm87_vm0, %v32_v14  ;;  %865 = vmatpush.msra.mxu1 %v50_v31  ;;  %v74_v14 = vld [vmem:[%s1418_s5 + $0x38] sm:$0xff] }
  0x22   :  { %232 = vmatpush.msrb.mxu0 %v53_v25  ;;  %312 = vmatpush.msra.mxu2 %v74_v14 }
  0x24   :  { %233 = vmatpush.msrb.mxu0 %v52_v27  ;;  %313 = vmatpush.msra.mxu2 %v73_v17  ;;  %v67_v27 = vld [vmem:[%s1418_s5] sm:$0xff] }
  0x26   :  { %234 = vmatpush.msrb.mxu0 %v51_v29  ;;  %314 = vmatpush.msra.mxu2 %v72_v19 }
  0x28   :  { %235 = vmatpush.msrb.mxu0 %v50_v31 }
  0x29   :  { %822 = vmatmul.msk.f32.gmra.mxu0 %vm87_vm0, %v33_v16 }
  0x31   :  { %823 = vmatmul.msk.f32.gmra.mxu0 %vm87_vm0, %v34_v18 }
  0x39   :  { %824 = vmatmul.msk.f32.gmra.mxu0 %vm87_vm0, %v35_v20  ;;  %v71_v20 = vld [vmem:[%s1418_s5 + $0x20] sm:$0xff] }
  0x3a   :  { %315 = vmatpush.msra.mxu2 %v71_v20 }
  0x3c   :  { %316 = vmatpush.msra.mxu2 %v70_v21 }
  0x41   :  { %825 = vmatmul.msk.f32.gmra.mxu0 %vm87_vm0, %v36_v22 }
  0x49   :  { %826 = vmatmul.msk.f32.gmra.mxu0 %vm87_vm0, %v37_v24  ;;  %v69_v24 = vld [vmem:[%s1418_s5 + $0x10] sm:$0xff] }
  0x4a   :  { %317 = vmatpush.msra.mxu2 %v69_v24 }
  0x51   :  { %827 = vmatmul.msk.f32.gmra.mxu0 %vm87_vm0, %v38_v26  ;;  %v68_v26 = vld [vmem:[%s1418_s5 + $0x8] sm:$0xff] }
  0x52   :  { %318 = vmatpush.msra.mxu2 %v68_v26 }
  0x54   :  { %319 = vmatpush.msra.mxu2 %v67_v27 }
  0x59   :  { %828 = vmatmul.msk.f32.gmra.mxu0 %vm87_vm0, %v39_v28 }
  0x61   :  { %829 = vmatmul.msk.f32.gmra.mxu0 %vm87_vm0, %v40_v30 }
  0x69   :  { %830 = vmatmul.msk.f32.gmra.mxu0 %vm87_vm0, %v41_v32 }
  0x71   :  { %831 = vmatmul.msk.f32.gmra.mxu0 %vm87_vm0, %v42_v33 }
  0x79   :  { %832 = vmatmul.msk.f32.gmra.mxu0 %vm87_vm0, %v43_v34 }
  0x81   :  { %833 = vmatmul.msk.f32.gmra.mxu0 %vm87_vm0, %v44_v35 }
  0x86   :  { %v153_v37 = vpop.f32.mrf.mxu0 }
  0x87   :  { %v154_v38 = vadd.f32 %v1089_v36, %v153_v37 }
  0x89   :  { %v201_v39 = vmax.f32 %v154_v38, 0.0  ;;  %v1158_v38 = vld [vmem:[%s1417_s4] ss:$0 sm:$0xff] }
  0x8b   :  { %236 = vmatmul.f32.vlgmr.msrb.gmra.mxu0 %v201_v39 }
  0x8e   :  { %v156_v40 = vpop.f32.mrf.mxu0 }
  0x8f   :  { %v157_v41 = vadd.f32 %v1089_v36, %v156_v40 }
  0x91   :  { %v202_v42 = vmax.f32 %v157_v41, 0.0 }
  0x93   :  { %239 = vmatmul.f32.vlgmr.msra.gmra.mxu1 %v202_v42 }
  0x96   :  { %v159_v43 = vpop.f32.mrf.mxu0 }
  0x97   :  { %v160_v44 = vadd.f32 %v1089_v36, %v159_v43 }
  0x99   :  { %v203_v45 = vmax.f32 %v160_v44, 0.0 }
  0x9b   :  { %242 = vmatmul.f32.gmra.mxu1 %v203_v45 }
  0x9e   :  { %v162_v46 = vpop.f32.mrf.mxu0 }
  0x9f   :  { %v163_v47 = vadd.f32 %v1089_v36, %v162_v46 }
  0xa1   :  { %v204_v48 = vmax.f32 %v163_v47, 0.0 }
  0xa3   :  { %245 = vmatmul.f32.gmra.mxu1 %v204_v48 }
  0xa6   :  { %v165_v49 = vpop.f32.mrf.mxu0 }
  0xa7   :  { %v166_v50 = vadd.f32 %v1089_v36, %v165_v49 }
  0xa9   :  { %v205_v51 = vmax.f32 %v166_v50, 0.0 }
  0xab   :  { %248 = vmatmul.f32.gmra.mxu1 %v205_v51 }
  0xae   :  { %v168_v52 = vpop.f32.mrf.mxu0 }
  0xaf   :  { %v169_v53 = vadd.f32 %v1089_v36, %v168_v52 }
  0xb1   :  { %v206_v54 = vmax.f32 %v169_v53, 0.0 }
  0xb3   :  { %251 = vmatmul.f32.gmra.mxu1 %v206_v54 }
  0xb6   :  { %v171_v55 = vpop.f32.mrf.mxu0 }
  0xb7   :  { %v172_v56 = vadd.f32 %v1089_v36, %v171_v55 }
  0xb9   :  { %v207_v57 = vmax.f32 %v172_v56, 0.0 }
  0xbb   :  { %254 = vmatmul.f32.gmra.mxu1 %v207_v57 }
  0xbe   :  { %v174_v58 = vpop.f32.mrf.mxu0 }
  0xbf   :  { %v175_v59 = vadd.f32 %v1089_v36, %v174_v58 }
  0xc1   :  { %v208_v60 = vmax.f32 %v175_v59, 0.0 }
  0xc3   :  { %257 = vmatmul.f32.gmra.mxu1 %v208_v60 }
  0xc6   :  { %v177_v61 = vpop.f32.mrf.mxu0 }
  0xc7   :  { %v178_v62 = vadd.f32 %v1089_v36, %v177_v61 }
  0xc9   :  { %v209_v63 = vmax.f32 %v178_v62, 0.0 }
  0xcb   :  { %260 = vmatmul.f32.gmra.mxu1 %v209_v63 }
  0xce   :  { %v180_v1 = vpop.f32.mrf.mxu0 }
  0xcf   :  { %v181_v2 = vadd.f32 %v1089_v36, %v180_v1 }
  0xd1   :  { %v210_v4 = vmax.f32 %v181_v2, 0.0 }
  0xd3   :  { %263 = vmatmul.f32.gmra.mxu1 %v210_v4 }
  0xd6   :  { %v183_v8 = vpop.f32.mrf.mxu0 }
  0xd7   :  { %v184_v9 = vadd.f32 %v1089_v36, %v183_v8 }
  0xd9   :  { %v211_v11 = vmax.f32 %v184_v9, 0.0 }
  0xdb   :  { %266 = vmatmul.f32.gmra.mxu1 %v211_v11 }
  0xde   :  { %v186_v15 = vpop.f32.mrf.mxu0 }
  0xdf   :  { %v187_v16 = vadd.f32 %v1089_v36, %v186_v15 }
  0xe1   :  { %v212_v18 = vmax.f32 %v187_v16, 0.0 }
  0xe3   :  { %269 = vmatmul.f32.gmra.mxu1 %v212_v18 }
  0xe6   :  { %v189_v22 = vpop.f32.mrf.mxu0 }
  0xe7   :  { %v190_v23 = vadd.f32 %v1089_v36, %v189_v22  ;;  %v1179_v22 = vld [vmem:[%s1419_s6] ss:$0 sm:$0xff] }
  0xe9   :  { %v213_v25 = vmax.f32 %v190_v23, 0.0 }
  0xeb   :  { %272 = vmatmul.f32.gmra.mxu1 %v213_v25 }
  0xee   :  { %v192_v28 = vpop.f32.mrf.mxu0 }
  0xef   :  { %v193_v29 = vadd.f32 %v1089_v36, %v192_v28 }
  0xf1   :  { %v214_v30 = vmax.f32 %v193_v29, 0.0 }
  0xf3   :  { %275 = vmatmul.f32.gmra.mxu1 %v214_v30 }
  0xf6   :  { %v195_v31 = vpop.f32.mrf.mxu0 }
  0xf7   :  { %v196_v32 = vadd.f32 %v1089_v36, %v195_v31 }
  0xf9   :  { %v215_v33 = vmax.f32 %v196_v32, 0.0 }
  0xfb   :  { %278 = vmatmul.f32.gmra.mxu1 %v215_v33 }
  0xfe   :  { %v198_v34 = vpop.f32.mrf.mxu0 }
  0xff   :  { %v199_v35 = vadd.f32 %v1089_v36, %v198_v34 }
 0x101   :  { %v216_v37 = vmax.f32 %v199_v35, 0.0 }
 0x103   :  { %281 = vmatmul.f32.gmra.mxu1 %v216_v37 }
 0x108   :  { %v237_v39 = vpop.f32.mrf.mxu0 }
 0x109   :  { %v238_v40 = vadd.f32 %v1158_v38, %v237_v39 }
 0x10b   :  { %v285_v41 = vmax.f32 %v238_v40, 0.0 }
 0x10d   :  { %320 = vmatmul.f32.vlgmr.msra.gmra.mxu2 %v285_v41 }
 0x110   :  { %v240_v42 = vpop.f32.mrf.mxu1 }
 0x111   :  { %v241_v43 = vadd.f32 %v1158_v38, %v240_v42 }
 0x113   :  { %v286_v44 = vmax.f32 %v241_v43, 0.0 }
 0x115   :  { %323 = vmatmul.f32.gmra.mxu2 %v286_v44 }
 0x118   :  { %v243_v45 = vpop.f32.mrf.mxu1 }
 0x119   :  { %v244_v36 = vadd.f32 %v1158_v38, %v243_v45 }
 0x11b   :  { %v287_v46 = vmax.f32 %v244_v36, 0.0 }
 0x11d   :  { %326 = vmatmul.f32.gmra.mxu2 %v287_v46 }
 0x120   :  { %v246_v47 = vpop.f32.mrf.mxu1 }
 0x121   :  { %v247_v48 = vadd.f32 %v1158_v38, %v246_v47 }
 0x123   :  { %v288_v49 = vmax.f32 %v247_v48, 0.0 }
 0x125   :  { %329 = vmatmul.f32.gmra.mxu2 %v288_v49 }
 0x128   :  { %v249_v50 = vpop.f32.mrf.mxu1 }
 0x129   :  { %v250_v51 = vadd.f32 %v1158_v38, %v249_v50 }
 0x12b   :  { %v289_v52 = vmax.f32 %v250_v51, 0.0 }
 0x12d   :  { %332 = vmatmul.f32.gmra.mxu2 %v289_v52 }
 0x130   :  { %v252_v53 = vpop.f32.mrf.mxu1 }
 0x131   :  { %v253_v54 = vadd.f32 %v1158_v38, %v252_v53 }
 0x133   :  { %v290_v55 = vmax.f32 %v253_v54, 0.0 }
 0x135   :  { %335 = vmatmul.f32.gmra.mxu2 %v290_v55 }
 0x138   :  { %v255_v56 = vpop.f32.mrf.mxu1 }
 0x139   :  { %v256_v57 = vadd.f32 %v1158_v38, %v255_v56 }
 0x13b   :  { %v291_v58 = vmax.f32 %v256_v57, 0.0 }
 0x13d   :  { %338 = vmatmul.f32.gmra.mxu2 %v291_v58 }
 0x140   :  { %v258_v59 = vpop.f32.mrf.mxu1 }
 0x141   :  { %v259_v60 = vadd.f32 %v1158_v38, %v258_v59 }
 0x143   :  { %v292_v61 = vmax.f32 %v259_v60, 0.0 }
 0x145   :  { %341 = vmatmul.f32.gmra.mxu2 %v292_v61  ;;  %v1241_v61 = vld [vmem:[%s1420_s7 + $0x18] sm:$0xff] }
 0x146   :  { %vm620_vm3 = vcmp.ne.f32.partialorder %v1241_v61, %v1241_v61 }
 0x148   :  { %v261_v62 = vpop.f32.mrf.mxu1 }
 0x149   :  { %v262_v63 = vadd.f32 %v1158_v38, %v261_v62 }
 0x14b   :  { %v293_v0 = vmax.f32 %v262_v63, 0.0  ;;  %v628_v63 = vand.u32 2147483647, %v1241_v61 }
 0x14d   :  { %344 = vmatmul.f32.gmra.mxu2 %v293_v0  ;;  %v1249_v0 = vld [vmem:[%s1420_s7 + $0x10] sm:$0xff] }
 0x14e   :  { %vm619_vm4 = vcmp.ne.f32.partialorder %v1249_v0, %v1249_v0 }
 0x150   :  { %v264_v1 = vpop.f32.mrf.mxu1 }
 0x151   :  { %v265_v2 = vadd.f32 %v1158_v38, %v264_v1 }
 0x153   :  { %v294_v3 = vmax.f32 %v265_v2, 0.0  ;;  %v632_v2 = vsub.f32 0.0, %v628_v63  ;;  %v615_v63 = vmax.f32 %v1249_v0, 0.0 }
 0x155   :  { %347 = vmatmul.f32.gmra.mxu2 %v294_v3  ;;  %v627_v3 = vand.u32 2147483647, %v1249_v0 }
 0x158   :  { %v267_v4 = vpop.f32.mrf.mxu1 }
 0x159   :  { %v268_v5 = vadd.f32 %v1158_v38, %v267_v4  ;;  %v1256_v4 = vld [vmem:[%s1420_s7 + $0x8] sm:$0xff] }
 0x15a   :  { %vm618_vm6 = vcmp.ne.f32.partialorder %v1256_v4, %v1256_v4 }
 0x15b   :  { %v295_v6 = vmax.f32 %v268_v5, 0.0  ;;  %v639_v5 = vmul.f32 1.442695, %v632_v2 }
 0x15d   :  { %350 = vmatmul.f32.gmra.mxu2 %v295_v6  ;;  %v631_v6 = vsub.f32 0.0, %v627_v3  ;;  %869 = vpow2.f32 %v639_v5 }
 0x160   :  { %v270_v7 = vpop.f32.mrf.mxu1 }
 0x161   :  { %v271_v8 = vadd.f32 %v1158_v38, %v270_v7  ;;  %v626_v7 = vand.u32 2147483647, %v1256_v4 }
 0x163   :  { %v296_v9 = vmax.f32 %v271_v8, 0.0 }
 0x165   :  { %353 = vmatmul.f32.gmra.mxu2 %v296_v9  ;;  %v1262_v9 = vld [vmem:[%s1420_s7] sm:$0xff] }
 0x166   :  { %vm617_vm8 = vcmp.ne.f32.partialorder %v1262_v9, %v1262_v9 }
 0x168   :  { %v273_v10 = vpop.f32.mrf.mxu1 }
 0x169   :  { %v274_v11 = vadd.f32 %v1158_v38, %v273_v10 }
 0x16b   :  { %v297_v12 = vmax.f32 %v274_v11, 0.0  ;;  %v637_v11 = vmul.f32 1.442695, %v631_v6 }
 0x16d   :  { %356 = vmatmul.f32.gmra.mxu2 %v297_v12  ;;  %v630_v12 = vsub.f32 0.0, %v626_v7  ;;  %871 = vpow2.f32 %v637_v11 }
 0x170   :  { %v276_v13 = vpop.f32.mrf.mxu1 }
 0x171   :  { %v277_v14 = vadd.f32 %v1158_v38, %v276_v13  ;;  %v625_v13 = vand.u32 2147483647, %v1262_v9 }
 0x173   :  { %v298_v15 = vmax.f32 %v277_v14, 0.0 }
 0x175   :  { %359 = vmatmul.f32.gmra.mxu2 %v298_v15  ;;  %v635_v15 = vmul.f32 1.442695, %v630_v12 }
 0x177   :  { %873 = vpow2.f32 %v635_v15 }
 0x178   :  { %v279_v16 = vpop.f32.mrf.mxu1 }
 0x179   :  { %v280_v17 = vadd.f32 %v1158_v38, %v279_v16  ;;  %v629_v16 = vsub.f32 0.0, %v625_v13 }
 0x17b   :  { %v299_v18 = vmax.f32 %v280_v17, 0.0 }
 0x17d   :  { %362 = vmatmul.f32.gmra.mxu2 %v299_v18  ;;  %v633_v18 = vmul.f32 1.442695, %v629_v16 }
 0x17f   :  { %875 = vpow2.f32 %v633_v18 }
 0x180   :  { %v282_v19 = vpop.f32.mrf.mxu1 }
 0x181   :  { %v283_v20 = vadd.f32 %v1158_v38, %v282_v19  ;;  %v870_v19 = vpop.eup %869 }
 0x183   :  { %v300_v21 = vmax.f32 %v283_v20, 0.0 }
 0x185   :  { %365 = vmatmul.f32.gmra.mxu2 %v300_v21  ;;  %v668_v21 = vadd.f32 1.0, %v870_v19 }
 0x187   :  { %877 = vlog2.f32 %v668_v21 }
 0x190   :  { %v321_v23 = vpop.f32.mrf.mxu2 }
 0x191   :  { %v1182_v24 = vadd.f32 %v1179_v22, %v321_v23  ;;  %v872_v23 = vpop.eup %871 }
 0x193   :  { %v369_v25 = vmul.f32 %v1182_v24, %v1182_v24 }
 0x195   :  { %v385_v26 = vsel %vm87_vm0, %v369_v25, 0.0 }
 0x196   :  { %386 = vadd.xlane.f32.xlu0 %v385_v26  ;;  %v659_v26 = vadd.f32 1.0, %v872_v23 }
 0x198   :  { %v324_v27 = vpop.f32.mrf.mxu2  ;;  %879 = vlog2.f32 %v659_v26 }
 0x199   :  { %v1188_v28 = vadd.f32 %v1179_v22, %v324_v27  ;;  %v874_v27 = vpop.eup %873 }
 0x19a   :  { %v656_v12 = vand.u32 2147483647, %v874_v27 }
 0x19b   :  { %v370_v29 = vmul.f32 %v1188_v28, %v1188_v28 }
 0x19c   :  { %vm657_vm5 = vcmp.lt.f32.partialorder %v656_v12, 0.0004427343 }
 0x19d   :  { %v388_v30 = vsel %vm87_vm0, %v370_v29, 0.0 }
 0x19e   :  { %389 = vadd.xlane.f32.xlu0 %v388_v30  ;;  %v650_v30 = vadd.f32 1.0, %v874_v27 }
 0x1a0   :  { %v327_v31 = vpop.f32.mrf.mxu2  ;;  %881 = vlog2.f32 %v650_v30 }
 0x1a1   :  { %v1194_v32 = vadd.f32 %v1179_v22, %v327_v31 }
 0x1a3   :  { %v371_v33 = vmul.f32 %v1194_v32, %v1194_v32 }
 0x1a5   :  { %v391_v34 = vsel %vm87_vm0, %v371_v33, 0.0  ;;  %v671_v33 = vmul.f32 -0.5, %v870_v19 }
 0x1a6   :  { %392 = vadd.xlane.f32.xlu1 %v391_v34  ;;  %v876_v34 = vpop.eup %875 }
 0x1a7   :  { %v644_v13 = vmul.f32 -0.5, %v876_v34 }
 0x1a8   :  { %v330_v35 = vpop.f32.mrf.mxu2 }
 0x1a9   :  { %v1200_v37 = vadd.f32 %v1179_v22, %v330_v35  ;;  %v672_v35 = vadd.f32 1.0, %v671_v33 }
 0x1ab   :  { %v372_v38 = vmul.f32 %v1200_v37, %v1200_v37 }
 0x1ad   :  { %v394_v39 = vsel %vm87_vm0, %v372_v38, 0.0  ;;  %v662_v38 = vmul.f32 -0.5, %v872_v23 }
 0x1ae   :  { %395 = vadd.xlane.f32.xlu1 %v394_v39  ;;  %v878_v39 = vpop.eup %877 }
 0x1b0   :  { %v333_v40 = vpop.f32.mrf.mxu2 }
 0x1b1   :  { %v1206_v41 = vadd.f32 %v1179_v22, %v333_v40 }
 0x1b3   :  { %v373_v42 = vmul.f32 %v1206_v41, %v1206_v41 }
 0x1b5   :  { %v397_v43 = vsel %vm87_vm0, %v373_v42, 0.0  ;;  %v674_v42 = vand.u32 2147483647, %v870_v19 }
 0x1b6   :  { %398 = vadd.xlane.f32.xlu2 %v397_v43  ;;  %v641_v43 = vadd.f32 1.0, %v876_v34 }
 0x1b7   :  { %vm675_vm1 = vcmp.lt.f32.partialorder %v674_v42, 0.0004427343 }
 0x1b8   :  { %v336_v44 = vpop.f32.mrf.mxu2  ;;  %883 = vlog2.f32 %v641_v43 }
 0x1b9   :  { %v1212_v45 = vadd.f32 %v1179_v22, %v336_v44 }
 0x1bb   :  { %v374_v36 = vmul.f32 %v1212_v45, %v1212_v45 }
 0x1bd   :  { %v400_v46 = vsel %vm87_vm0, %v374_v36, 0.0  ;;  %v670_v36 = vmul.f32 0.6931472, %v878_v39 }
 0x1be   :  { %401 = vadd.xlane.f32.xlu2 %v400_v46  ;;  %v673_v46 = vmul.f32 %v870_v19, %v672_v35 }
 0x1c0   :  { %v339_v47 = vpop.f32.mrf.mxu2 }
 0x1c1   :  { %v1218_v48 = vadd.f32 %v1179_v22, %v339_v47  ;;  %v663_v47 = vadd.f32 1.0, %v662_v38 }
 0x1c3   :  { %v375_v49 = vmul.f32 %v1218_v48, %v1218_v48 }
 0x1c5   :  { %v403_v50 = vsel %vm87_vm0, %v375_v49, 0.0  ;;  %v880_v49 = vpop.eup %879 }
 0x1c6   :  { %404 = vadd.xlane.f32.xlu0 %v403_v50  ;;  %v616_v50 = vmax.f32 %v1241_v61, 0.0 }
 0x1c8   :  { %v342_v51 = vpop.f32.mrf.mxu2 }
 0x1c9   :  { %v1224_v52 = vadd.f32 %v1179_v22, %v342_v51  ;;  %v665_v51 = vand.u32 2147483647, %v872_v23 }
 0x1cb   :  { %v376_v53 = vmul.f32 %v1224_v52, %v1224_v52  ;;  %vm666_vm2 = vcmp.lt.f32.partialorder %v665_v51, 0.0004427343 }
 0x1cd   :  { %v406_v54 = vsel %vm87_vm0, %v376_v53, 0.0  ;;  %v653_v53 = vmul.f32 -0.5, %v874_v27 }
 0x1ce   :  { %407 = vadd.xlane.f32.xlu1 %v406_v54 }
 0x1d0   :  { %v345_v55 = vpop.f32.mrf.mxu2 }
 0x1d1   :  { %v1230_v56 = vadd.f32 %v1179_v22, %v345_v55  ;;  %v676_v55 = vsel %vm675_vm1, %v673_v46, %v670_v36 }
 0x1d3   :  { %v377_v57 = vmul.f32 %v1230_v56, %v1230_v56 }
 0x1d5   :  { %v409_v58 = vsel %vm87_vm0, %v377_v57, 0.0  ;;  %v661_v57 = vmul.f32 0.6931472, %v880_v49 }
 0x1d6   :  { %410 = vadd.xlane.f32.xlu2 %v409_v58  ;;  %v664_v58 = vmul.f32 %v872_v23, %v663_v47 }
 0x1d8   :  { %v348_v59 = vpop.f32.mrf.mxu2  ;;  %v667_v3 = vsel %vm666_vm2, %v664_v58, %v661_v57 }
 0x1d9   :  { %v1236_v60 = vadd.f32 %v1179_v22, %v348_v59  ;;  %v882_v59 = vpop.eup %881  ;;  %v679_v7 = vadd.f32 %v667_v3, %v615_v63 }
 0x1da   :  { %v652_v5 = vmul.f32 0.6931472, %v882_v59  ;;  %v884_v23 = vpop.eup %883 }
 0x1db   :  { %v378_v62 = vmul.f32 %v1236_v60, %v1236_v60  ;;  %v683_v15 = vsel %vm619_vm4, %v1249_v0, %v679_v7 }
 0x1dd   :  { %v412_v1 = vsel %vm87_vm0, %v378_v62, 0.0  ;;  %v680_v62 = vadd.f32 %v676_v55, %v616_v50 }
 0x1de   :  { %413 = vadd.xlane.f32.xlu0 %v412_v1  ;;  %v654_v1 = vadd.f32 1.0, %v653_v53 }
 0x1df   :  { %v684_v6 = vsel %vm620_vm3, %v1241_v61, %v680_v62  ;;  %v645_v61 = vadd.f32 1.0, %v644_v13 }
 0x1e0   :  { %v351_v8 = vpop.f32.mrf.mxu2  ;;  %v655_v11 = vmul.f32 %v874_v27, %v654_v1  ;;  %745 = vmatpush.msra.mxu3 %v684_v6  ;;  %v613_v27 = vmax.f32 %v1262_v9, 0.0 }
 0x1e1   :  { %v1265_v10 = vadd.f32 %v1179_v22, %v351_v8  ;;  %v614_v8 = vmax.f32 %v1256_v4, 0.0  ;;  %v646_v21 = vmul.f32 %v876_v34, %v645_v61 }
 0x1e2   :  { %746 = vmatpush.msra.mxu3 %v683_v15  ;;  %v658_v18 = vsel %vm657_vm5, %v655_v11, %v652_v5 }
 0x1e3   :  { %v379_v14 = vmul.f32 %v1265_v10, %v1265_v10 }
 0x1e5   :  { %v415_v17 = vsel %vm87_vm0, %v379_v14, 0.0 }
 0x1e6   :  { %416 = vadd.xlane.f32.xlu1 %v415_v17  ;;  %v647_v17 = vand.u32 2147483647, %v876_v34 }
 0x1e8   :  { %v354_v20 = vpop.f32.mrf.mxu2  ;;  %vm648_vm7 = vcmp.lt.f32.partialorder %v647_v17, 0.0004427343 }
 0x1e9   :  { %v1272_v25 = vadd.f32 %v1179_v22, %v354_v20  ;;  %v678_v20 = vadd.f32 %v658_v18, %v614_v8 }
 0x1eb   :  { %v380_v29 = vmul.f32 %v1272_v25, %v1272_v25  ;;  %v682_v0 = vsel %vm618_vm6, %v1256_v4, %v678_v20 }
 0x1ec   :  { %747 = vmatpush.msra.mxu3 %v682_v0 }
 0x1ed   :  { %v418_v31 = vsel %vm87_vm0, %v380_v29, 0.0  ;;  %v643_v29 = vmul.f32 0.6931472, %v884_v23 }
 0x1ee   :  { %419 = vadd.xlane.f32.xlu2 %v418_v31 }
 0x1ef   :  { %v649_v31 = vsel %vm648_vm7, %v646_v21, %v643_v29 }
 0x1f0   :  { %v357_v40 = vpop.f32.mrf.mxu2  ;;  %v677_v34 = vadd.f32 %v649_v31, %v613_v27 }
 0x1f1   :  { %v1278_v44 = vadd.f32 %v1179_v22, %v357_v40 }
 0x1f2   :  { %v681_v4 = vsel %vm617_vm8, %v1262_v9, %v677_v34 }
 0x1f3   :  { %v381_v54 = vmul.f32 %v1278_v44, %v1278_v44  ;;  %748 = vmatpush.msra.mxu3 %v681_v4 }
 0x1f5   :  { %v421_v2 = vsel %vm87_vm0, %v381_v54, 0.0 }
 0x1f6   :  { %422 = vadd.xlane.f32.xlu0 %v421_v2 }
 0x1f8   :  { %v360_v14 = vpop.f32.mrf.mxu2 }
 0x1f9   :  { %v1293_v16 = vadd.f32 %v1179_v22, %v360_v14 }
 0x1fb   :  { %v382_v19 = vmul.f32 %v1293_v16, %v1293_v16 }
 0x1fd   :  { %v424_v26 = vsel %vm87_vm0, %v382_v19, 0.0 }
 0x1fe   :  { %425 = vadd.xlane.f32.xlu1 %v424_v26 }
 0x200   :  { %v363_v30 = vpop.f32.mrf.mxu2 }
 0x201   :  { %v1305_v33 = vadd.f32 %v1179_v22, %v363_v30 }
 0x203   :  { %v383_v35 = vmul.f32 %v1305_v33, %v1305_v33 }
 0x205   :  { %v427_v38 = vsel %vm87_vm0, %v383_v35, 0.0 }
 0x206   :  { %428 = vadd.xlane.f32.xlu2 %v427_v38 }
 0x208   :  { %v366_v39 = vpop.f32.mrf.mxu2 }
 0x209   :  { %v1312_v40 = vadd.f32 %v1179_v22, %v366_v39  ;;  %v387_v42 = vpop.xlane.xlu0 %386 }
 0x20a   :  { %885 = vrsqrt.f32 %v387_v42  ;;  %vm439_vm10 = vweird.f32 %v387_v42 }
 0x20b   :  { %v384_v43 = vmul.f32 %v1312_v40, %v1312_v40 }
 0x20d   :  { %v430_v36 = vsel %vm87_vm0, %v384_v43, 0.0 }
 0x20e   :  { %431 = vadd.xlane.f32.xlu0 %v430_v36 }
 0x210   :  { %v886_v46 = vpop.eup %885 }
 0x211   :  { %v434_v47 = vmul.f32 %v886_v46, %v387_v42  ;;  %v390_v49 = vpop.xlane.xlu0 %389  ;;  %vm440_vm9 = vweird.f32 %v886_v46 }
 0x212   :  { %887 = vrsqrt.f32 %v390_v49  ;;  %vm441_vm11 = vmor %vm439_vm10, %vm440_vm9  ;;  %vm449_vm13 = vweird.f32 %v390_v49 }
 0x213   :  { %v435_v9 = vmul.f32 %v886_v46, %v434_v47 }
 0x215   :  { %v436_v50 = vmul.f32 0.5, %v435_v9 }
 0x217   :  { %v437_v51 = vsub.f32 1.5, %v436_v50 }
 0x218   :  { %v888_v53 = vpop.eup %887 }
 0x219   :  { %v438_v54 = vmul.f32 %v886_v46, %v437_v51  ;;  %v444_v22 = vmul.f32 %v888_v53, %v390_v49  ;;  %v393_v55 = vpop.xlane.xlu1 %392  ;;  %vm450_vm12 = vweird.f32 %v888_v53 }
 0x21a   :  { %889 = vrsqrt.f32 %v393_v55  ;;  %vm451_vm14 = vmor %vm449_vm13, %vm450_vm12  ;;  %vm459_vm1 = vweird.f32 %v393_v55 }
 0x21b   :  { %v445_v57 = vmul.f32 %v888_v53, %v444_v22  ;;  %v442_v58 = vsel %vm441_vm11, %v886_v46, %v438_v54 }
 0x21c   :  { %v593_v59 = vmul.f32 %v442_v58, %v1182_v24 }
 0x21d   :  { %v446_v62 = vmul.f32 0.5, %v445_v57 }
 0x21e   :  { %834 = vmatmul.msk.f32.vlgmr.msra.gmra.mxu3 %vm87_vm0, %v593_v59 }
 0x21f   :  { %v447_v63 = vsub.f32 1.5, %v446_v62 }
 0x220   :  { %v890_v1 = vpop.eup %889 }
 0x221   :  { %v448_v2 = vmul.f32 %v888_v53, %v447_v63  ;;  %v454_v3 = vmul.f32 %v890_v1, %v393_v55  ;;  %v396_v5 = vpop.xlane.xlu1 %395  ;;  %vm460_vm15 = vweird.f32 %v890_v1 }
 0x222   :  { %891 = vrsqrt.f32 %v396_v5  ;;  %vm461_vm2 = vmor %vm459_vm1, %vm460_vm15  ;;  %vm469_vm4 = vweird.f32 %v396_v5 }
 0x223   :  { %v455_v6 = vmul.f32 %v890_v1, %v454_v3  ;;  %v452_v7 = vsel %vm451_vm14, %v888_v53, %v448_v2 }
 0x224   :  { %v594_v8 = vmul.f32 %v452_v7, %v1188_v28 }
 0x225   :  { %v456_v11 = vmul.f32 0.5, %v455_v6 }
 0x226   :  { %835 = vmatmul.msk.f32.gmra.mxu3 %vm87_vm0, %v594_v8 }
 0x227   :  { %v457_v24 = vsub.f32 1.5, %v456_v11 }
 0x228   :  { %v892_v12 = vpop.eup %891 }
 0x229   :  { %v458_v13 = vmul.f32 %v890_v1, %v457_v24  ;;  %v464_v14 = vmul.f32 %v892_v12, %v396_v5  ;;  %v399_v15 = vpop.xlane.xlu2 %398  ;;  %vm470_vm3 = vweird.f32 %v892_v12 }
 0x22a   :  { %893 = vrsqrt.f32 %v399_v15  ;;  %vm471_vm5 = vmor %vm469_vm4, %vm470_vm3  ;;  %vm479_vm7 = vweird.f32 %v399_v15 }
 0x22b   :  { %v465_v61 = vmul.f32 %v892_v12, %v464_v14  ;;  %v462_v17 = vsel %vm461_vm2, %v890_v1, %v458_v13 }
 0x22c   :  { %v595_v18 = vmul.f32 %v462_v17, %v1194_v32 }
 0x22d   :  { %v466_v19 = vmul.f32 0.5, %v465_v61 }
 0x22e   :  { %836 = vmatmul.msk.f32.gmra.mxu3 %vm87_vm0, %v595_v18 }
 0x22f   :  { %v467_v28 = vsub.f32 1.5, %v466_v19 }
 0x230   :  { %v894_v20 = vpop.eup %893 }
 0x231   :  { %v468_v21 = vmul.f32 %v892_v12, %v467_v28  ;;  %v474_v23 = vmul.f32 %v894_v20, %v399_v15  ;;  %v402_v26 = vpop.xlane.xlu2 %401  ;;  %vm480_vm6 = vweird.f32 %v894_v20 }
 0x232   :  { %895 = vrsqrt.f32 %v402_v26  ;;  %vm481_vm8 = vmor %vm479_vm7, %vm480_vm6  ;;  %vm489_vm10 = vweird.f32 %v402_v26 }
 0x233   :  { %v475_v0 = vmul.f32 %v894_v20, %v474_v23  ;;  %v472_v27 = vsel %vm471_vm5, %v892_v12, %v468_v21 }
 0x234   :  { %v596_v29 = vmul.f32 %v472_v27, %v1200_v37 }
 0x235   :  { %v476_v30 = vmul.f32 0.5, %v475_v0 }
 0x236   :  { %837 = vmatmul.msk.f32.gmra.mxu3 %vm87_vm0, %v596_v29 }
 0x237   :  { %v477_v32 = vsub.f32 1.5, %v476_v30 }
 0x238   :  { %v896_v31 = vpop.eup %895 }
 0x239   :  { %v478_v34 = vmul.f32 %v894_v20, %v477_v32  ;;  %v484_v35 = vmul.f32 %v896_v31, %v402_v26  ;;  %v405_v4 = vpop.xlane.xlu0 %404  ;;  %vm490_vm9 = vweird.f32 %v896_v31 }
 0x23a   :  { %897 = vrsqrt.f32 %v405_v4  ;;  %vm491_vm11 = vmor %vm489_vm10, %vm490_vm9  ;;  %vm499_vm13 = vweird.f32 %v405_v4 }
 0x23b   :  { %v485_v38 = vmul.f32 %v896_v31, %v484_v35  ;;  %v482_v39 = vsel %vm481_vm8, %v894_v20, %v478_v34 }
 0x23c   :  { %v597_v42 = vmul.f32 %v482_v39, %v1206_v41 }
 0x23d   :  { %v486_v43 = vmul.f32 0.5, %v485_v38 }
 0x23e   :  { %838 = vmatmul.msk.f32.gmra.mxu3 %vm87_vm0, %v597_v42 }
 0x23f   :  { %v487_v37 = vsub.f32 1.5, %v486_v43 }
 0x240   :  { %v898_v36 = vpop.eup %897 }
 0x241   :  { %v488_v46 = vmul.f32 %v896_v31, %v487_v37  ;;  %v494_v47 = vmul.f32 %v898_v36, %v405_v4  ;;  %v408_v49 = vpop.xlane.xlu1 %407  ;;  %vm500_vm12 = vweird.f32 %v898_v36 }
 0x242   :  { %899 = vrsqrt.f32 %v408_v49  ;;  %vm501_vm14 = vmor %vm499_vm13, %vm500_vm12  ;;  %vm509_vm1 = vweird.f32 %v408_v49 }
 0x243   :  { %v495_v9 = vmul.f32 %v898_v36, %v494_v47  ;;  %v492_v50 = vsel %vm491_vm11, %v896_v31, %v488_v46 }
 0x244   :  { %v598_v51 = vmul.f32 %v492_v50, %v1212_v45 }
 0x245   :  { %v496_v53 = vmul.f32 0.5, %v495_v9 }
 0x246   :  { %839 = vmatmul.msk.f32.gmra.mxu3 %vm87_vm0, %v598_v51 }
 0x247   :  { %v497_v41 = vsub.f32 1.5, %v496_v53 }
 0x248   :  { %v900_v54 = vpop.eup %899 }
 0x249   :  { %v498_v22 = vmul.f32 %v898_v36, %v497_v41  ;;  %v504_v55 = vmul.f32 %v900_v54, %v408_v49  ;;  %v411_v57 = vpop.xlane.xlu2 %410  ;;  %vm510_vm15 = vweird.f32 %v900_v54 }
 0x24a   :  { %901 = vrsqrt.f32 %v411_v57  ;;  %vm511_vm2 = vmor %vm509_vm1, %vm510_vm15  ;;  %vm519_vm4 = vweird.f32 %v411_v57 }
 0x24b   :  { %v505_v58 = vmul.f32 %v900_v54, %v504_v55  ;;  %v502_v59 = vsel %vm501_vm14, %v898_v36, %v498_v22 }
 0x24c   :  { %v599_v62 = vmul.f32 %v502_v59, %v1218_v48 }
 0x24d   :  { %v506_v63 = vmul.f32 0.5, %v505_v58 }
 0x24e   :  { %840 = vmatmul.msk.f32.gmra.mxu3 %vm87_vm0, %v599_v62 }
 0x24f   :  { %v507_v45 = vsub.f32 1.5, %v506_v63 }
 0x250   :  { %v902_v1 = vpop.eup %901 }
 0x251   :  { %v508_v2 = vmul.f32 %v900_v54, %v507_v45  ;;  %v514_v3 = vmul.f32 %v902_v1, %v411_v57  ;;  %v414_v5 = vpop.xlane.xlu0 %413  ;;  %vm520_vm3 = vweird.f32 %v902_v1 }
 0x252   :  { %903 = vrsqrt.f32 %v414_v5  ;;  %vm521_vm5 = vmor %vm519_vm4, %vm520_vm3  ;;  %vm529_vm7 = vweird.f32 %v414_v5 }
 0x253   :  { %v515_v6 = vmul.f32 %v902_v1, %v514_v3  ;;  %v512_v7 = vsel %vm511_vm2, %v900_v54, %v508_v2 }
 0x254   :  { %v600_v8 = vmul.f32 %v512_v7, %v1224_v52 }
 0x255   :  { %v516_v11 = vmul.f32 0.5, %v515_v6 }
 0x256   :  { %841 = vmatmul.msk.f32.gmra.mxu3 %vm87_vm0, %v600_v8 }
 0x257   :  { %v517_v48 = vsub.f32 1.5, %v516_v11 }
 0x258   :  { %v904_v24 = vpop.eup %903 }
 0x259   :  { %v518_v12 = vmul.f32 %v902_v1, %v517_v48  ;;  %v524_v13 = vmul.f32 %v904_v24, %v414_v5  ;;  %v417_v14 = vpop.xlane.xlu1 %416  ;;  %vm530_vm6 = vweird.f32 %v904_v24 }
 0x25a   :  { %905 = vrsqrt.f32 %v417_v14  ;;  %vm531_vm8 = vmor %vm529_vm7, %vm530_vm6  ;;  %vm539_vm10 = vweird.f32 %v417_v14 }
 0x25b   :  { %v525_v15 = vmul.f32 %v904_v24, %v524_v13  ;;  %v522_v61 = vsel %vm521_vm5, %v902_v1, %v518_v12 }
 0x25c   :  { %v601_v17 = vmul.f32 %v522_v61, %v1230_v56 }
 0x25d   :  { %v526_v18 = vmul.f32 0.5, %v525_v15 }
 0x25e   :  { %842 = vmatmul.msk.f32.gmra.mxu3 %vm87_vm0, %v601_v17 }
 0x25f   :  { %v527_v52 = vsub.f32 1.5, %v526_v18 }
 0x260   :  { %v906_v19 = vpop.eup %905 }
 0x261   :  { %v528_v28 = vmul.f32 %v904_v24, %v527_v52  ;;  %v534_v20 = vmul.f32 %v906_v19, %v417_v14  ;;  %v420_v21 = vpop.xlane.xlu2 %419  ;;  %vm540_vm9 = vweird.f32 %v906_v19 }
 0x262   :  { %907 = vrsqrt.f32 %v420_v21  ;;  %vm541_vm11 = vmor %vm539_vm10, %vm540_vm9  ;;  %vm549_vm13 = vweird.f32 %v420_v21 }
 0x263   :  { %v535_v23 = vmul.f32 %v906_v19, %v534_v20  ;;  %v532_v26 = vsel %vm531_vm8, %v904_v24, %v528_v28 }
 0x264   :  { %v602_v0 = vmul.f32 %v532_v26, %v1236_v60 }
 0x265   :  { %v536_v27 = vmul.f32 0.5, %v535_v23 }
 0x266   :  { %843 = vmatmul.msk.f32.gmra.mxu3 %vm87_vm0, %v602_v0 }
 0x267   :  { %v537_v56 = vsub.f32 1.5, %v536_v27 }
 0x268   :  { %v908_v29 = vpop.eup %907 }
 0x269   :  { %v538_v30 = vmul.f32 %v906_v19, %v537_v56  ;;  %v544_v32 = vmul.f32 %v908_v29, %v420_v21  ;;  %v423_v31 = vpop.xlane.xlu0 %422  ;;  %vm550_vm12 = vweird.f32 %v908_v29 }
 0x26a   :  { %909 = vrsqrt.f32 %v423_v31  ;;  %vm551_vm14 = vmor %vm549_vm13, %vm550_vm12  ;;  %vm559_vm1 = vweird.f32 %v423_v31 }
 0x26b   :  { %v545_v34 = vmul.f32 %v908_v29, %v544_v32  ;;  %v542_v35 = vsel %vm541_vm11, %v906_v19, %v538_v30 }
 0x26c   :  { %v603_v4 = vmul.f32 %v542_v35, %v1265_v10 }
 0x26d   :  { %v546_v38 = vmul.f32 0.5, %v545_v34 }
 0x26e   :  { %844 = vmatmul.msk.f32.gmra.mxu3 %vm87_vm0, %v603_v4 }
 0x26f   :  { %v547_v60 = vsub.f32 1.5, %v546_v38 }
 0x270   :  { %v910_v39 = vpop.eup %909 }
 0x271   :  { %v548_v42 = vmul.f32 %v908_v29, %v547_v60  ;;  %v554_v43 = vmul.f32 %v910_v39, %v423_v31  ;;  %v426_v37 = vpop.xlane.xlu1 %425  ;;  %vm560_vm15 = vweird.f32 %v910_v39 }
 0x272   :  { %911 = vrsqrt.f32 %v426_v37  ;;  %vm561_vm2 = vmor %vm559_vm1, %vm560_vm15  ;;  %vm569_vm4 = vweird.f32 %v426_v37 }
 0x273   :  { %v555_v36 = vmul.f32 %v910_v39, %v554_v43  ;;  %v552_v46 = vsel %vm551_vm14, %v908_v29, %v548_v42 }
 0x274   :  { %v604_v47 = vmul.f32 %v552_v46, %v1272_v25 }
 0x275   :  { %v556_v49 = vmul.f32 0.5, %v555_v36 }
 0x276   :  { %845 = vmatmul.msk.f32.gmra.mxu3 %vm87_vm0, %v604_v47 }
 0x277   :  { %v557_v10 = vsub.f32 1.5, %v556_v49 }
 0x278   :  { %v912_v9 = vpop.eup %911 }
 0x279   :  { %v558_v50 = vmul.f32 %v910_v39, %v557_v10  ;;  %v564_v51 = vmul.f32 %v912_v9, %v426_v37  ;;  %v429_v53 = vpop.xlane.xlu2 %428  ;;  %vm570_vm3 = vweird.f32 %v912_v9 }
 0x27a   :  { %913 = vrsqrt.f32 %v429_v53  ;;  %vm571_vm5 = vmor %vm569_vm4, %vm570_vm3  ;;  %vm579_vm7 = vweird.f32 %v429_v53 }
 0x27b   :  { %v565_v41 = vmul.f32 %v912_v9, %v564_v51  ;;  %v562_v54 = vsel %vm561_vm2, %v910_v39, %v558_v50 }
 0x27c   :  { %v605_v22 = vmul.f32 %v562_v54, %v1278_v44 }
 0x27d   :  { %v566_v55 = vmul.f32 0.5, %v565_v41 }
 0x27e   :  { %846 = vmatmul.msk.f32.gmra.mxu3 %vm87_vm0, %v605_v22 }
 0x27f   :  { %v567_v25 = vsub.f32 1.5, %v566_v55 }
 0x280   :  { %v914_v57 = vpop.eup %913 }
 0x281   :  { %v568_v58 = vmul.f32 %v912_v9, %v567_v25  ;;  %v574_v59 = vmul.f32 %v914_v57, %v429_v53  ;;  %v432_v62 = vpop.xlane.xlu0 %431  ;;  %vm580_vm6 = vweird.f32 %v914_v57 }
 0x282   :  { %915 = vrsqrt.f32 %v432_v62  ;;  %vm581_vm8 = vmor %vm579_vm7, %vm580_vm6  ;;  %vm589_vm10 = vweird.f32 %v432_v62 }
 0x283   :  { %v575_v63 = vmul.f32 %v914_v57, %v574_v59  ;;  %v572_v45 = vsel %vm571_vm5, %v912_v9, %v568_v58 }
 0x284   :  { %v606_v1 = vmul.f32 %v572_v45, %v1293_v16 }
 0x285   :  { %v576_v2 = vmul.f32 0.5, %v575_v63 }
 0x286   :  { %847 = vmatmul.msk.f32.gmra.mxu3 %vm87_vm0, %v606_v1 }
 0x287   :  { %v577_v44 = vsub.f32 1.5, %v576_v2 }
 0x288   :  { %v916_v3 = vpop.eup %915 }
 0x289   :  { %v578_v5 = vmul.f32 %v914_v57, %v577_v44  ;;  %v584_v6 = vmul.f32 %v916_v3, %v432_v62  ;;  %vm590_vm9 = vweird.f32 %v916_v3 }
 0x28a   :  { %vm591_vm11 = vmor %vm589_vm10, %vm590_vm9 }
 0x28b   :  { %v585_v7 = vmul.f32 %v916_v3, %v584_v6  ;;  %v582_v8 = vsel %vm581_vm8, %v914_v57, %v578_v5 }
 0x28c   :  { %v607_v11 = vmul.f32 %v582_v8, %v1305_v33 }
 0x28d   :  { %v586_v48 = vmul.f32 0.5, %v585_v7 }
 0x28e   :  { %848 = vmatmul.msk.f32.gmra.mxu3 %vm87_vm0, %v607_v11 }
 0x28f   :  { %v587_v24 = vsub.f32 1.5, %v586_v48 }
 0x291   :  { %v588_v16 = vmul.f32 %v916_v3, %v587_v24 }
 0x293   :  { %v592_v12 = vsel %vm591_vm11, %v916_v3, %v588_v16 }
 0x294   :  { %v608_v13 = vmul.f32 %v592_v12, %v1312_v40 }
 0x296   :  { %849 = vmatmul.msk.f32.gmra.mxu3 %vm87_vm0, %v608_v13 }
 0x2a1   :  { %v750_v14 = vpop.f32.mrf.mxu3 }
 0x2a2   :  { %798 = vst.msk [vmem:[%s1421_s8] sm:$0xff] %vm87_vm0, %v750_v14 }
 0x2a9   :  { %v753_v33 = vpop.f32.mrf.mxu3 }
 0x2aa   :  { %799 = vst.msk [vmem:[%s1421_s8 + $0x8] sm:$0xff] %vm87_vm0, %v753_v33 }
 0x2b1   :  { %v756_v15 = vpop.f32.mrf.mxu3 }
 0x2b2   :  { %800 = vst.msk [vmem:[%s1421_s8 + $0x10] sm:$0xff] %vm87_vm0, %v756_v15 }
 0x2b9   :  { %v759_v40 = vpop.f32.mrf.mxu3 }
 0x2ba   :  { %801 = vst.msk [vmem:[%s1421_s8 + $0x18] sm:$0xff] %vm87_vm0, %v759_v40 }
 0x2c1   :  { %v762_v61 = vpop.f32.mrf.mxu3 }
 0x2c2   :  { %802 = vst.msk [vmem:[%s1421_s8 + $0x20] sm:$0xff] %vm87_vm0, %v762_v61 }
 0x2c9   :  { %v765_v17 = vpop.f32.mrf.mxu3 }
 0x2ca   :  { %803 = vst.msk [vmem:[%s1421_s8 + $0x28] sm:$0xff] %vm87_vm0, %v765_v17 }
 0x2d1   :  { %v768_v18 = vpop.f32.mrf.mxu3 }
 0x2d2   :  { %804 = vst.msk [vmem:[%s1421_s8 + $0x30] sm:$0xff] %vm87_vm0, %v768_v18 }
 0x2d9   :  { %v771_v52 = vpop.f32.mrf.mxu3 }
 0x2da   :  { %805 = vst.msk [vmem:[%s1421_s8 + $0x38] sm:$0xff] %vm87_vm0, %v771_v52 }
 0x2e1   :  { %v774_v19 = vpop.f32.mrf.mxu3 }
 0x2e2   :  { %806 = vst.msk [vmem:[%s1421_s8 + $0x40] sm:$0xff] %vm87_vm0, %v774_v19 }
 0x2e9   :  { %v777_v28 = vpop.f32.mrf.mxu3 }
 0x2ea   :  { %807 = vst.msk [vmem:[%s1421_s8 + $0x48] sm:$0xff] %vm87_vm0, %v777_v28 }
 0x2f1   :  { %v780_v20 = vpop.f32.mrf.mxu3 }
 0x2f2   :  { %808 = vst.msk [vmem:[%s1421_s8 + $0x50] sm:$0xff] %vm87_vm0, %v780_v20 }
 0x2f9   :  { %v783_v21 = vpop.f32.mrf.mxu3 }
 0x2fa   :  { %809 = vst.msk [vmem:[%s1421_s8 + $0x58] sm:$0xff] %vm87_vm0, %v783_v21 }
 0x301   :  { %v786_v23 = vpop.f32.mrf.mxu3 }
 0x302   :  { %810 = vst.msk [vmem:[%s1421_s8 + $0x60] sm:$0xff] %vm87_vm0, %v786_v23 }
 0x309   :  { %v789_v26 = vpop.f32.mrf.mxu3 }
 0x30a   :  { %811 = vst.msk [vmem:[%s1421_s8 + $0x68] sm:$0xff] %vm87_vm0, %v789_v26 }
 0x311   :  { %v792_v0 = vpop.f32.mrf.mxu3 }
 0x312   :  { %812 = vst.msk [vmem:[%s1421_s8 + $0x70] sm:$0xff] %vm87_vm0, %v792_v0 }
 0x319   :  { %v795_v27 = vpop.f32.mrf.mxu3 }
 0x31a   :  { %813 = vst.msk [vmem:[%s1421_s8 + $0x78] sm:$0xff] %vm87_vm0, %v795_v27 }

</bundles_post_ra>
